<compile_context>
chip_gen: v5e
topology: v5e:2x2
jax: 0.10.0
libtpu: 0.0.40
codegen_flags: <defaults>
</compile_context>

<pallas_src>
import jax
import jax.numpy as jnp
from jax.experimental import pallas as pl
from jax.experimental.pallas import tpu as pltpu

# ---- model hyper-parameters (small, consistent with a BERT config) ----------
B, S, H = 2, 8, 32          # batch, seq_len, hidden_size
BS = B * S                  # stacked batch*seq rows
NH = 2                      # num attention heads
DH = H // NH                # head dim
INTER = 128                 # intermediate (FFN) size
VOCAB, MAX_POS, TYPE_VOCAB = 64, 32, 2
N_LAYERS = 2
N_LABELS = 2
LN_EPS = 1e-12
LOGIT_PAD = 128             # lane-dense padded classifier output width
NEG_INF = -1e9


# =============================== fused kernel ================================
def _bert_kernel(
    ids_ref, addmask_ref,                                 # inputs
    wemb_ref, pos_ref, typ_ref, eg_ref, eb_ref,           # embeddings
    wqkv_ref, bqkv_ref, wo_ref, bo_ref, ln1g_ref, ln1b_ref,   # attention (stacked over layers)
    wi_ref, bi_ref, wo2_ref, bo2_ref, ln2g_ref, ln2b_ref,     # FFN (stacked over layers)
    poolw_ref, poolb_ref, clsw_ref, clsb_ref,             # pooler / classifier
    seq_ref, pooled_ref, logits_ref,                      # outputs
):
    f32 = jnp.float32
    bf16 = jnp.bfloat16

    def dense(x, w, b):
        # bf16 MXU inputs, f32 accumulation; bias add in f32
        return jnp.dot(x.astype(bf16), w.astype(bf16),
                       preferred_element_type=f32) + b

    def layer_norm(h, g, b):
        mu = jnp.mean(h, axis=-1, keepdims=True)
        var = jnp.mean(jnp.square(h - mu), axis=-1, keepdims=True)
        return (h - mu) * jax.lax.rsqrt(var + LN_EPS) * g + b

    # ---- embeddings: in-kernel one-hot gather on the MXU --------------------
    ids = ids_ref[...]                                          # (BS, 1) int32
    vocab_iota = jax.lax.broadcasted_iota(jnp.int32, (BS, VOCAB), 1)
    onehot = jnp.where(vocab_iota == ids, 1.0, 0.0).astype(bf16)      # (BS, VOCAB)
    tok = jnp.dot(onehot, wemb_ref[...], preferred_element_type=f32)  # (BS, H)
    # position rows pre-tiled to (BS, H); token_type_ids == 0 row
    x = layer_norm(tok + pos_ref[...] + typ_ref[...], eg_ref[...], eb_ref[...])

    # block-diagonal (per-batch) additive attention mask, incl. padding mask
    addmask = addmask_ref[...]                                  # (BS, BS) f32

    scale = 1.0 / (DH ** 0.5)
    for l in range(N_LAYERS):
        # ---- self-attention: fused QKV proj, whole batch in one matmul ------
        qkv = dense(x, wqkv_ref[l], bqkv_ref[l])                # (BS, 3H) f32
        ctx_heads = []
        for h in range(NH):
            q_h = qkv[:, h * DH:(h + 1) * DH]                   # (BS, DH)
            k_h = qkv[:, H + h * DH: H + (h + 1) * DH]
            v_h = qkv[:, 2 * H + h * DH: 2 * H + (h + 1) * DH]
            s = jax.lax.dot_general(
                q_h.astype(bf16), k_h.astype(bf16),
                (((1,), (1,)), ((), ())),                       # q @ k^T
                preferred_element_type=f32) * scale + addmask   # (BS, BS)
            s = s - jnp.max(s, axis=-1, keepdims=True)
            p = jnp.exp(s)                                      # cross-batch -> 0
            p = p * pl.reciprocal(jnp.sum(p, axis=-1, keepdims=True), approx=True)
            ctx_heads.append(
                jnp.dot(p.astype(bf16), v_h.astype(bf16),
                        preferred_element_type=f32))            # (BS, DH)
        ctx = jnp.concatenate(ctx_heads, axis=-1)               # (BS, H)
        attn_out = dense(ctx, wo_ref[l], bo_ref[l])
        x = layer_norm(attn_out + x, ln1g_ref[l], ln1b_ref[l])

        # ---- feed-forward ----
        # TODO(synk): HF BERT uses the exact erf GELU; tanh approximation used
        # here (EUP-supported), difference is O(1e-3).
        h1 = jax.nn.gelu(dense(x, wi_ref[l], bi_ref[l]), approximate=True)  # (BS, INTER)
        ffn = dense(h1, wo2_ref[l], bo2_ref[l])
        x = layer_norm(ffn + x, ln2g_ref[l], ln2b_ref[l])

    # ---- outputs -------------------------------------------------------------
    seq_ref[...] = x                                            # (BS, H)
    # [CLS] rows are at b*S (static slices)
    cls = jnp.concatenate([x[b * S: b * S + 1, :] for b in range(B)], axis=0)  # (B, H)
    pooled = jnp.tanh(dense(cls, poolw_ref[...], poolb_ref[...]))
    pooled_ref[...] = pooled                                    # (B, H)
    # dropout(pooled) is identity in eval mode; classifier written lane-dense
    logits_ref[...] = dense(pooled, clsw_ref[...], clsb_ref[...])  # (B, LOGIT_PAD)


# ============================== pallas_call wrapper ===========================
_VMEM = pl.BlockSpec(memory_space=pltpu.MemorySpace.VMEM)
_N_INPUTS = 23


@jax.jit
def bert_forward(params, input_ids, attention_mask):
    # --- tiny XLA prologue (few KB total) ------------------------------------
    ids_r = input_ids.astype(jnp.int32).reshape(BS, 1)

    # block-diagonal per-batch mask combined with the padding mask, as an
    # additive bias (HF "extended attention mask" semantics)
    row_b = jnp.arange(BS, dtype=jnp.int32) // S
    same_batch = (row_b[:, None] == row_b[None, :]).astype(jnp.float32)   # (BS, BS)
    colkeep = attention_mask.astype(jnp.float32).reshape(1, BS)
    addmask = (1.0 - same_batch * colkeep) * NEG_INF                      # (BS, BS)

    pos_tiled = jnp.tile(params["pos_emb"][:S], (B, 1))         # (BS, H)
    typ_row = params["type_emb"][0:1]                           # token_type_ids == 0

    seq, pooled, logits_pad = pl.pallas_call(
        _bert_kernel,
        out_shape=(
            jax.ShapeDtypeStruct((BS, H), jnp.float32),
            jax.ShapeDtypeStruct((B, H), jnp.float32),
            jax.ShapeDtypeStruct((B, LOGIT_PAD), jnp.float32),
        ),
        in_specs=[_VMEM] * _N_INPUTS,
        out_specs=(_VMEM, _VMEM, _VMEM),
    )(
        ids_r, addmask,
        params["word_emb"], pos_tiled, typ_row,
        params["emb_ln_g"], params["emb_ln_b"],
        params["wqkv"], params["bqkv"], params["wo"], params["bo"],
        params["ln1_g"], params["ln1_b"],
        params["wi"], params["bi"], params["wo2"], params["bo2"],
        params["ln2_g"], params["ln2_b"],
        params["pool_w"], params["pool_b"],
        params["cls_w_pad"], params["cls_b_pad"],
    )

    logits = logits_pad[:, :N_LABELS]
    seq_bsh = seq.reshape(B, S, H)
    # matches: return (output, (latent, latent_in.squeeze()))
    return logits, (pooled, jnp.squeeze(seq_bsh))


# ================================ parameters =================================
def init_params(key):
    def norm(k, shape):
        return 0.02 * jax.random.normal(k, shape, jnp.float32)

    ks = iter(jax.random.split(key, 32))

    def stack(shape):
        return jnp.stack([norm(next(ks), shape) for _ in range(N_LAYERS)])

    # fused QKV weight: concat q, k, v along the output dim -> (L, H, 3H)
    qw, kw, vw = stack((H, H)), stack((H, H)), stack((H, H))
    wqkv = jnp.concatenate([qw, kw, vw], axis=-1)

    params = {
        "word_emb": norm(next(ks), (VOCAB, H)).astype(jnp.bfloat16),
        "pos_emb": norm(next(ks), (MAX_POS, H)),
        "type_emb": norm(next(ks), (TYPE_VOCAB, H)),
        "emb_ln_g": jnp.ones((1, H), jnp.float32),
        "emb_ln_b": jnp.zeros((1, H), jnp.float32),
        "wqkv": wqkv.astype(jnp.bfloat16),
        "bqkv": jnp.zeros((N_LAYERS, 1, 3 * H), jnp.float32),
        "wo": stack((H, H)).astype(jnp.bfloat16),
        "bo": jnp.zeros((N_LAYERS, 1, H), jnp.float32),
        "ln1_g": jnp.ones((N_LAYERS, 1, H), jnp.float32),
        "ln1_b": jnp.zeros((N_LAYERS, 1, H), jnp.float32),
        "wi": stack((H, INTER)).astype(jnp.bfloat16),
        "bi": jnp.zeros((N_LAYERS, 1, INTER), jnp.float32),
        "wo2": stack((INTER, H)).astype(jnp.bfloat16),
        "bo2": jnp.zeros((N_LAYERS, 1, H), jnp.float32),
        "ln2_g": jnp.ones((N_LAYERS, 1, H), jnp.float32),
        "ln2_b": jnp.zeros((N_LAYERS, 1, H), jnp.float32),
        "pool_w": norm(next(ks), (H, H)).astype(jnp.bfloat16),
        "pool_b": jnp.zeros((1, H), jnp.float32),
        "cls_w_pad": jnp.pad(norm(next(ks), (H, N_LABELS)),
                             ((0, 0), (0, LOGIT_PAD - N_LABELS))
                             ).astype(jnp.bfloat16),
        "cls_b_pad": jnp.zeros((1, LOGIT_PAD), jnp.float32),
    }
    return params


# ==================================== main ====================================
if __name__ == "__main__":
    key = jax.random.PRNGKey(0)
    k_param, k_ids = jax.random.split(key)
    params = init_params(k_param)

    input_ids = jax.random.randint(k_ids, (B, S), 0, VOCAB, dtype=jnp.int32)
    attention_mask = jnp.ones((B, S), jnp.int32).at[1, S - 2:].set(0)

    logits, (latent, latent_in) = bert_forward(params, input_ids, attention_mask)
    jax.block_until_ready((logits, latent, latent_in))

    assert logits.shape == (B, N_LABELS)
    assert latent.shape == (B, H)
    assert latent_in.shape == (B, S, H)
    print("KERNEL_OK")
</pallas_src>

<mosaic_0001>
module attributes {stable_mosaic.version = 11 : i64} {
  func.func @_bert_kernel(%arg0: memref<16x1xi32, #tpu.memory_space<vmem>>, %arg1: memref<16x16xf32, #tpu.memory_space<vmem>>, %arg2: memref<64x32xbf16, #tpu.memory_space<vmem>>, %arg3: memref<16x32xf32, #tpu.memory_space<vmem>>, %arg4: memref<1x32xf32, #tpu.memory_space<vmem>>, %arg5: memref<1x32xf32, #tpu.memory_space<vmem>>, %arg6: memref<1x32xf32, #tpu.memory_space<vmem>>, %arg7: memref<2x32x96xbf16, #tpu.memory_space<vmem>>, %arg8: memref<2x1x96xf32, #tpu.memory_space<vmem>>, %arg9: memref<2x32x32xbf16, #tpu.memory_space<vmem>>, %arg10: memref<2x1x32xf32, #tpu.memory_space<vmem>>, %arg11: memref<2x1x32xf32, #tpu.memory_space<vmem>>, %arg12: memref<2x1x32xf32, #tpu.memory_space<vmem>>, %arg13: memref<2x32x128xbf16, #tpu.memory_space<vmem>>, %arg14: memref<2x1x128xf32, #tpu.memory_space<vmem>>, %arg15: memref<2x128x32xbf16, #tpu.memory_space<vmem>>, %arg16: memref<2x1x32xf32, #tpu.memory_space<vmem>>, %arg17: memref<2x1x32xf32, #tpu.memory_space<vmem>>, %arg18: memref<2x1x32xf32, #tpu.memory_space<vmem>>, %arg19: memref<32x32xbf16, #tpu.memory_space<vmem>>, %arg20: memref<1x32xf32, #tpu.memory_space<vmem>>, %arg21: memref<32x128xbf16, #tpu.memory_space<vmem>>, %arg22: memref<1x128xf32, #tpu.memory_space<vmem>>, %arg23: memref<16x32xf32, #tpu.memory_space<vmem>>, %arg24: memref<2x32xf32, #tpu.memory_space<vmem>>, %arg25: memref<2x128xf32, #tpu.memory_space<vmem>>) attributes {dimension_semantics = [], scalar_prefetch = 0 : i64, scratch_operands = 0 : i64, tpu.core_type = #tpu.core_type<tc>} {
    %c0 = arith.constant 0 : index
    %c0_0 = arith.constant 0 : index
    %0 = vector.load %arg0[%c0, %c0_0] : memref<16x1xi32, #tpu.memory_space<vmem>>, vector<16x1xi32>
    %1 = tpu.iota {dimensions = array<i32: 1>} : vector<16x64xi32>
    %2 = vector.broadcast %0 : vector<16x1xi32> to vector<16x64xi32>
    %3 = arith.cmpi eq, %1, %2 : vector<16x64xi32>
    %cst = arith.constant 1.000000e+00 : f32
    %cst_1 = arith.constant 0.000000e+00 : f32
    %4 = vector.broadcast %cst : f32 to vector<16x64xf32>
    %5 = vector.broadcast %cst_1 : f32 to vector<16x64xf32>
    %6 = arith.select %3, %4, %5 : vector<16x64xi1>, vector<16x64xf32>
    %7 = arith.truncf %6 : vector<16x64xf32> to vector<16x64xbf16>
    %c0_2 = arith.constant 0 : index
    %c0_3 = arith.constant 0 : index
    %8 = vector.load %arg2[%c0_2, %c0_3] : memref<64x32xbf16, #tpu.memory_space<vmem>>, vector<64x32xbf16>
    %cst_4 = arith.constant dense<0.000000e+00> : vector<16x32xf32>
    %9 = tpu.matmul %7, %8, %cst_4 {dimension_numbers = #tpu.dot_dimension_numbers<[1], [0], [0], [1], [0, 0, 1, 1], [], []>} : vector<16x64xbf16>, vector<64x32xbf16>, vector<16x32xf32> -> vector<16x32xf32>
    %c0_5 = arith.constant 0 : index
    %c0_6 = arith.constant 0 : index
    %10 = vector.load %arg3[%c0_5, %c0_6] : memref<16x32xf32, #tpu.memory_space<vmem>>, vector<16x32xf32>
    %11 = arith.addf %9, %10 : vector<16x32xf32>
    %c0_7 = arith.constant 0 : index
    %c0_8 = arith.constant 0 : index
    %12 = vector.load %arg4[%c0_7, %c0_8] : memref<1x32xf32, #tpu.memory_space<vmem>>, vector<1x32xf32>
    %13 = vector.broadcast %12 : vector<1x32xf32> to vector<16x32xf32>
    %14 = arith.addf %11, %13 : vector<16x32xf32>
    %c0_9 = arith.constant 0 : index
    %c0_10 = arith.constant 0 : index
    %15 = vector.load %arg5[%c0_9, %c0_10] : memref<1x32xf32, #tpu.memory_space<vmem>>, vector<1x32xf32>
    %c0_11 = arith.constant 0 : index
    %c0_12 = arith.constant 0 : index
    %16 = vector.load %arg6[%c0_11, %c0_12] : memref<1x32xf32, #tpu.memory_space<vmem>>, vector<1x32xf32>
    %cst_13 = arith.constant dense<0.000000e+00> : vector<16xf32>
    %17 = vector.multi_reduction <add>, %14, %cst_13 [1] : vector<16x32xf32> to vector<16xf32>
    %18 = vector.shape_cast %17 : vector<16xf32> to vector<16x1xf32>
    %cst_14 = arith.constant 3.200000e+01 : f32
    %19 = vector.broadcast %cst_14 : f32 to vector<16x1xf32>
    %20 = arith.divf %18, %19 : vector<16x1xf32>
    %21 = vector.broadcast %20 : vector<16x1xf32> to vector<16x32xf32>
    %22 = arith.subf %14, %21 : vector<16x32xf32>
    %23 = arith.mulf %22, %22 : vector<16x32xf32>
    %cst_15 = arith.constant dense<0.000000e+00> : vector<16xf32>
    %24 = vector.multi_reduction <add>, %23, %cst_15 [1] : vector<16x32xf32> to vector<16xf32>
    %25 = vector.shape_cast %24 : vector<16xf32> to vector<16x1xf32>
    %cst_16 = arith.constant 3.200000e+01 : f32
    %26 = vector.broadcast %cst_16 : f32 to vector<16x1xf32>
    %27 = arith.divf %25, %26 : vector<16x1xf32>
    %28 = vector.broadcast %20 : vector<16x1xf32> to vector<16x32xf32>
    %29 = arith.subf %14, %28 : vector<16x32xf32>
    %cst_17 = arith.constant 9.99999996E-13 : f32
    %30 = vector.broadcast %cst_17 : f32 to vector<16x1xf32>
    %31 = arith.addf %27, %30 : vector<16x1xf32>
    %32 = math.rsqrt %31 : vector<16x1xf32>
    %33 = vector.broadcast %32 : vector<16x1xf32> to vector<16x32xf32>
    %34 = arith.mulf %29, %33 : vector<16x32xf32>
    %35 = vector.broadcast %15 : vector<1x32xf32> to vector<16x32xf32>
    %36 = arith.mulf %34, %35 : vector<16x32xf32>
    %37 = vector.broadcast %16 : vector<1x32xf32> to vector<16x32xf32>
    %38 = arith.addf %36, %37 : vector<16x32xf32>
    %c0_18 = arith.constant 0 : index
    %c0_19 = arith.constant 0 : index
    %39 = vector.load %arg1[%c0_18, %c0_19] : memref<16x16xf32, #tpu.memory_space<vmem>>, vector<16x16xf32>
    %c0_20 = arith.constant 0 : index
    %c0_21 = arith.constant 0 : index
    %c0_22 = arith.constant 0 : index
    %40 = vector.load %arg7[%c0_20, %c0_21, %c0_22] : memref<2x32x96xbf16, #tpu.memory_space<vmem>>, vector<1x32x96xbf16>
    %41 = vector.shape_cast %40 : vector<1x32x96xbf16> to vector<32x96xbf16>
    %c0_23 = arith.constant 0 : index
    %c0_24 = arith.constant 0 : index
    %c0_25 = arith.constant 0 : index
    %42 = vector.load %arg8[%c0_23, %c0_24, %c0_25] : memref<2x1x96xf32, #tpu.memory_space<vmem>>, vector<1x1x96xf32>
    %43 = vector.shape_cast %42 : vector<1x1x96xf32> to vector<1x96xf32>
    %44 = arith.truncf %38 : vector<16x32xf32> to vector<16x32xbf16>
    %cst_26 = arith.constant dense<0.000000e+00> : vector<16x96xf32>
    %45 = tpu.matmul %44, %41, %cst_26 {dimension_numbers = #tpu.dot_dimension_numbers<[1], [0], [0], [1], [0, 0, 1, 1], [], []>} : vector<16x32xbf16>, vector<32x96xbf16>, vector<16x96xf32> -> vector<16x96xf32>
    %46 = vector.broadcast %43 : vector<1x96xf32> to vector<16x96xf32>
    %47 = arith.addf %45, %46 : vector<16x96xf32>
    %48 = vector.extract_strided_slice %47 {offsets = [0, 0], sizes = [16, 16], strides = [1, 1]} : vector<16x96xf32> to vector<16x16xf32>
    %49 = vector.extract_strided_slice %47 {offsets = [0, 32], sizes = [16, 16], strides = [1, 1]} : vector<16x96xf32> to vector<16x16xf32>
    %50 = vector.extract_strided_slice %47 {offsets = [0, 64], sizes = [16, 16], strides = [1, 1]} : vector<16x96xf32> to vector<16x16xf32>
    %51 = arith.truncf %48 : vector<16x16xf32> to vector<16x16xbf16>
    %52 = arith.truncf %49 : vector<16x16xf32> to vector<16x16xbf16>
    %cst_27 = arith.constant dense<0.000000e+00> : vector<16x16xf32>
    %53 = tpu.matmul %51, %52, %cst_27 {dimension_numbers = #tpu.dot_dimension_numbers<[1], [1], [0], [0], [0, 0, 1, 0], [], []>} : vector<16x16xbf16>, vector<16x16xbf16>, vector<16x16xf32> -> vector<16x16xf32>
    %cst_28 = arith.constant 2.500000e-01 : f32
    %54 = vector.broadcast %cst_28 : f32 to vector<16x16xf32>
    %55 = arith.mulf %53, %54 : vector<16x16xf32>
    %56 = arith.addf %55, %39 : vector<16x16xf32>
    %cst_29 = arith.constant dense<0xFF800000> : vector<16xf32>
    %57 = vector.multi_reduction <maximumf>, %56, %cst_29 [1] : vector<16x16xf32> to vector<16xf32>
    %58 = vector.shape_cast %57 : vector<16xf32> to vector<16x1xf32>
    %59 = vector.broadcast %58 : vector<16x1xf32> to vector<16x16xf32>
    %60 = arith.subf %56, %59 : vector<16x16xf32>
    %61 = math.exp %60 : vector<16x16xf32>
    %cst_30 = arith.constant dense<0.000000e+00> : vector<16xf32>
    %62 = vector.multi_reduction <add>, %61, %cst_30 [1] : vector<16x16xf32> to vector<16xf32>
    %63 = vector.shape_cast %62 : vector<16xf32> to vector<16x1xf32>
    %64 = tpu.reciprocal %63 {approx = true} : vector<16x1xf32> -> vector<16x1xf32>
    %65 = vector.broadcast %64 : vector<16x1xf32> to vector<16x16xf32>
    %66 = arith.mulf %61, %65 : vector<16x16xf32>
    %67 = arith.truncf %66 : vector<16x16xf32> to vector<16x16xbf16>
    %68 = arith.truncf %50 : vector<16x16xf32> to vector<16x16xbf16>
    %cst_31 = arith.constant dense<0.000000e+00> : vector<16x16xf32>
    %69 = tpu.matmul %67, %68, %cst_31 {dimension_numbers = #tpu.dot_dimension_numbers<[1], [0], [0], [1], [0, 0, 1, 1], [], []>} : vector<16x16xbf16>, vector<16x16xbf16>, vector<16x16xf32> -> vector<16x16xf32>
    %70 = vector.extract_strided_slice %47 {offsets = [0, 16], sizes = [16, 16], strides = [1, 1]} : vector<16x96xf32> to vector<16x16xf32>
    %71 = vector.extract_strided_slice %47 {offsets = [0, 48], sizes = [16, 16], strides = [1, 1]} : vector<16x96xf32> to vector<16x16xf32>
    %72 = vector.extract_strided_slice %47 {offsets = [0, 80], sizes = [16, 16], strides = [1, 1]} : vector<16x96xf32> to vector<16x16xf32>
    %73 = arith.truncf %70 : vector<16x16xf32> to vector<16x16xbf16>
    %74 = arith.truncf %71 : vector<16x16xf32> to vector<16x16xbf16>
    %cst_32 = arith.constant dense<0.000000e+00> : vector<16x16xf32>
    %75 = tpu.matmul %73, %74, %cst_32 {dimension_numbers = #tpu.dot_dimension_numbers<[1], [1], [0], [0], [0, 0, 1, 0], [], []>} : vector<16x16xbf16>, vector<16x16xbf16>, vector<16x16xf32> -> vector<16x16xf32>
    %cst_33 = arith.constant 2.500000e-01 : f32
    %76 = vector.broadcast %cst_33 : f32 to vector<16x16xf32>
    %77 = arith.mulf %75, %76 : vector<16x16xf32>
    %78 = arith.addf %77, %39 : vector<16x16xf32>
    %cst_34 = arith.constant dense<0xFF800000> : vector<16xf32>
    %79 = vector.multi_reduction <maximumf>, %78, %cst_34 [1] : vector<16x16xf32> to vector<16xf32>
    %80 = vector.shape_cast %79 : vector<16xf32> to vector<16x1xf32>
    %81 = vector.broadcast %80 : vector<16x1xf32> to vector<16x16xf32>
    %82 = arith.subf %78, %81 : vector<16x16xf32>
    %83 = math.exp %82 : vector<16x16xf32>
    %cst_35 = arith.constant dense<0.000000e+00> : vector<16xf32>
    %84 = vector.multi_reduction <add>, %83, %cst_35 [1] : vector<16x16xf32> to vector<16xf32>
    %85 = vector.shape_cast %84 : vector<16xf32> to vector<16x1xf32>
    %86 = tpu.reciprocal %85 {approx = true} : vector<16x1xf32> -> vector<16x1xf32>
    %87 = vector.broadcast %86 : vector<16x1xf32> to vector<16x16xf32>
    %88 = arith.mulf %83, %87 : vector<16x16xf32>
    %89 = arith.truncf %88 : vector<16x16xf32> to vector<16x16xbf16>
    %90 = arith.truncf %72 : vector<16x16xf32> to vector<16x16xbf16>
    %cst_36 = arith.constant dense<0.000000e+00> : vector<16x16xf32>
    %91 = tpu.matmul %89, %90, %cst_36 {dimension_numbers = #tpu.dot_dimension_numbers<[1], [0], [0], [1], [0, 0, 1, 1], [], []>} : vector<16x16xbf16>, vector<16x16xbf16>, vector<16x16xf32> -> vector<16x16xf32>
    %92 = tpu.concatenate %69, %91 in 1 : vector<16x16xf32>, vector<16x16xf32> -> vector<16x32xf32>
    %c0_37 = arith.constant 0 : index
    %c0_38 = arith.constant 0 : index
    %c0_39 = arith.constant 0 : index
    %93 = vector.load %arg9[%c0_37, %c0_38, %c0_39] : memref<2x32x32xbf16, #tpu.memory_space<vmem>>, vector<1x32x32xbf16>
    %94 = vector.shape_cast %93 : vector<1x32x32xbf16> to vector<32x32xbf16>
    %c0_40 = arith.constant 0 : index
    %c0_41 = arith.constant 0 : index
    %c0_42 = arith.constant 0 : index
    %95 = vector.load %arg10[%c0_40, %c0_41, %c0_42] : memref<2x1x32xf32, #tpu.memory_space<vmem>>, vector<1x1x32xf32>
    %96 = vector.shape_cast %95 : vector<1x1x32xf32> to vector<1x32xf32>
    %97 = arith.truncf %92 : vector<16x32xf32> to vector<16x32xbf16>
    %cst_43 = arith.constant dense<0.000000e+00> : vector<16x32xf32>
    %98 = tpu.matmul %97, %94, %cst_43 {dimension_numbers = #tpu.dot_dimension_numbers<[1], [0], [0], [1], [0, 0, 1, 1], [], []>} : vector<16x32xbf16>, vector<32x32xbf16>, vector<16x32xf32> -> vector<16x32xf32>
    %99 = vector.broadcast %96 : vector<1x32xf32> to vector<16x32xf32>
    %100 = arith.addf %98, %99 : vector<16x32xf32>
    %101 = arith.addf %100, %38 : vector<16x32xf32>
    %c0_44 = arith.constant 0 : index
    %c0_45 = arith.constant 0 : index
    %c0_46 = arith.constant 0 : index
    %102 = vector.load %arg11[%c0_44, %c0_45, %c0_46] : memref<2x1x32xf32, #tpu.memory_space<vmem>>, vector<1x1x32xf32>
    %103 = vector.shape_cast %102 : vector<1x1x32xf32> to vector<1x32xf32>
    %c0_47 = arith.constant 0 : index
    %c0_48 = arith.constant 0 : index
    %c0_49 = arith.constant 0 : index
    %104 = vector.load %arg12[%c0_47, %c0_48, %c0_49] : memref<2x1x32xf32, #tpu.memory_space<vmem>>, vector<1x1x32xf32>
    %105 = vector.shape_cast %104 : vector<1x1x32xf32> to vector<1x32xf32>
    %cst_50 = arith.constant dense<0.000000e+00> : vector<16xf32>
    %106 = vector.multi_reduction <add>, %101, %cst_50 [1] : vector<16x32xf32> to vector<16xf32>
    %107 = vector.shape_cast %106 : vector<16xf32> to vector<16x1xf32>
    %cst_51 = arith.constant 3.200000e+01 : f32
    %108 = vector.broadcast %cst_51 : f32 to vector<16x1xf32>
    %109 = arith.divf %107, %108 : vector<16x1xf32>
    %110 = vector.broadcast %109 : vector<16x1xf32> to vector<16x32xf32>
    %111 = arith.subf %101, %110 : vector<16x32xf32>
    %112 = arith.mulf %111, %111 : vector<16x32xf32>
    %cst_52 = arith.constant dense<0.000000e+00> : vector<16xf32>
    %113 = vector.multi_reduction <add>, %112, %cst_52 [1] : vector<16x32xf32> to vector<16xf32>
    %114 = vector.shape_cast %113 : vector<16xf32> to vector<16x1xf32>
    %cst_53 = arith.constant 3.200000e+01 : f32
    %115 = vector.broadcast %cst_53 : f32 to vector<16x1xf32>
    %116 = arith.divf %114, %115 : vector<16x1xf32>
    %117 = vector.broadcast %109 : vector<16x1xf32> to vector<16x32xf32>
    %118 = arith.subf %101, %117 : vector<16x32xf32>
    %cst_54 = arith.constant 9.99999996E-13 : f32
    %119 = vector.broadcast %cst_54 : f32 to vector<16x1xf32>
    %120 = arith.addf %116, %119 : vector<16x1xf32>
    %121 = math.rsqrt %120 : vector<16x1xf32>
    %122 = vector.broadcast %121 : vector<16x1xf32> to vector<16x32xf32>
    %123 = arith.mulf %118, %122 : vector<16x32xf32>
    %124 = vector.broadcast %103 : vector<1x32xf32> to vector<16x32xf32>
    %125 = arith.mulf %123, %124 : vector<16x32xf32>
    %126 = vector.broadcast %105 : vector<1x32xf32> to vector<16x32xf32>
    %127 = arith.addf %125, %126 : vector<16x32xf32>
    %c0_55 = arith.constant 0 : index
    %c0_56 = arith.constant 0 : index
    %c0_57 = arith.constant 0 : index
    %128 = vector.load %arg13[%c0_55, %c0_56, %c0_57] : memref<2x32x128xbf16, #tpu.memory_space<vmem>>, vector<1x32x128xbf16>
    %129 = vector.shape_cast %128 : vector<1x32x128xbf16> to vector<32x128xbf16>
    %c0_58 = arith.constant 0 : index
    %c0_59 = arith.constant 0 : index
    %c0_60 = arith.constant 0 : index
    %130 = vector.load %arg14[%c0_58, %c0_59, %c0_60] : memref<2x1x128xf32, #tpu.memory_space<vmem>>, vector<1x1x128xf32>
    %131 = vector.shape_cast %130 : vector<1x1x128xf32> to vector<1x128xf32>
    %132 = arith.truncf %127 : vector<16x32xf32> to vector<16x32xbf16>
    %cst_61 = arith.constant dense<0.000000e+00> : vector<16x128xf32>
    %133 = tpu.matmul %132, %129, %cst_61 {dimension_numbers = #tpu.dot_dimension_numbers<[1], [0], [0], [1], [0, 0, 1, 1], [], []>} : vector<16x32xbf16>, vector<32x128xbf16>, vector<16x128xf32> -> vector<16x128xf32>
    %134 = vector.broadcast %131 : vector<1x128xf32> to vector<16x128xf32>
    %135 = arith.addf %133, %134 : vector<16x128xf32>
    %136 = arith.mulf %135, %135 : vector<16x128xf32>
    %137 = arith.mulf %135, %136 : vector<16x128xf32>
    %cst_62 = arith.constant 4.471500e-02 : f32
    %138 = vector.broadcast %cst_62 : f32 to vector<16x128xf32>
    %139 = arith.mulf %138, %137 : vector<16x128xf32>
    %140 = arith.addf %135, %139 : vector<16x128xf32>
    %cst_63 = arith.constant 0.797884583 : f32
    %141 = vector.broadcast %cst_63 : f32 to vector<16x128xf32>
    %142 = arith.mulf %141, %140 : vector<16x128xf32>
    %143 = math.tanh %142 : vector<16x128xf32>
    %cst_64 = arith.constant 1.000000e+00 : f32
    %144 = vector.broadcast %cst_64 : f32 to vector<16x128xf32>
    %145 = arith.addf %144, %143 : vector<16x128xf32>
    %cst_65 = arith.constant 5.000000e-01 : f32
    %146 = vector.broadcast %cst_65 : f32 to vector<16x128xf32>
    %147 = arith.mulf %146, %145 : vector<16x128xf32>
    %148 = arith.mulf %135, %147 : vector<16x128xf32>
    %c0_66 = arith.constant 0 : index
    %c0_67 = arith.constant 0 : index
    %c0_68 = arith.constant 0 : index
    %149 = vector.load %arg15[%c0_66, %c0_67, %c0_68] : memref<2x128x32xbf16, #tpu.memory_space<vmem>>, vector<1x128x32xbf16>
    %150 = vector.shape_cast %149 : vector<1x128x32xbf16> to vector<128x32xbf16>
    %c0_69 = arith.constant 0 : index
    %c0_70 = arith.constant 0 : index
    %c0_71 = arith.constant 0 : index
    %151 = vector.load %arg16[%c0_69, %c0_70, %c0_71] : memref<2x1x32xf32, #tpu.memory_space<vmem>>, vector<1x1x32xf32>
    %152 = vector.shape_cast %151 : vector<1x1x32xf32> to vector<1x32xf32>
    %153 = arith.truncf %148 : vector<16x128xf32> to vector<16x128xbf16>
    %cst_72 = arith.constant dense<0.000000e+00> : vector<16x32xf32>
    %154 = tpu.matmul %153, %150, %cst_72 {dimension_numbers = #tpu.dot_dimension_numbers<[1], [0], [0], [1], [0, 0, 1, 1], [], []>} : vector<16x128xbf16>, vector<128x32xbf16>, vector<16x32xf32> -> vector<16x32xf32>
    %155 = vector.broadcast %152 : vector<1x32xf32> to vector<16x32xf32>
    %156 = arith.addf %154, %155 : vector<16x32xf32>
    %157 = arith.addf %156, %127 : vector<16x32xf32>
    %c0_73 = arith.constant 0 : index
    %c0_74 = arith.constant 0 : index
    %c0_75 = arith.constant 0 : index
    %158 = vector.load %arg17[%c0_73, %c0_74, %c0_75] : memref<2x1x32xf32, #tpu.memory_space<vmem>>, vector<1x1x32xf32>
    %159 = vector.shape_cast %158 : vector<1x1x32xf32> to vector<1x32xf32>
    %c0_76 = arith.constant 0 : index
    %c0_77 = arith.constant 0 : index
    %c0_78 = arith.constant 0 : index
    %160 = vector.load %arg18[%c0_76, %c0_77, %c0_78] : memref<2x1x32xf32, #tpu.memory_space<vmem>>, vector<1x1x32xf32>
    %161 = vector.shape_cast %160 : vector<1x1x32xf32> to vector<1x32xf32>
    %cst_79 = arith.constant dense<0.000000e+00> : vector<16xf32>
    %162 = vector.multi_reduction <add>, %157, %cst_79 [1] : vector<16x32xf32> to vector<16xf32>
    %163 = vector.shape_cast %162 : vector<16xf32> to vector<16x1xf32>
    %cst_80 = arith.constant 3.200000e+01 : f32
    %164 = vector.broadcast %cst_80 : f32 to vector<16x1xf32>
    %165 = arith.divf %163, %164 : vector<16x1xf32>
    %166 = vector.broadcast %165 : vector<16x1xf32> to vector<16x32xf32>
    %167 = arith.subf %157, %166 : vector<16x32xf32>
    %168 = arith.mulf %167, %167 : vector<16x32xf32>
    %cst_81 = arith.constant dense<0.000000e+00> : vector<16xf32>
    %169 = vector.multi_reduction <add>, %168, %cst_81 [1] : vector<16x32xf32> to vector<16xf32>
    %170 = vector.shape_cast %169 : vector<16xf32> to vector<16x1xf32>
    %cst_82 = arith.constant 3.200000e+01 : f32
    %171 = vector.broadcast %cst_82 : f32 to vector<16x1xf32>
    %172 = arith.divf %170, %171 : vector<16x1xf32>
    %173 = vector.broadcast %165 : vector<16x1xf32> to vector<16x32xf32>
    %174 = arith.subf %157, %173 : vector<16x32xf32>
    %cst_83 = arith.constant 9.99999996E-13 : f32
    %175 = vector.broadcast %cst_83 : f32 to vector<16x1xf32>
    %176 = arith.addf %172, %175 : vector<16x1xf32>
    %177 = math.rsqrt %176 : vector<16x1xf32>
    %178 = vector.broadcast %177 : vector<16x1xf32> to vector<16x32xf32>
    %179 = arith.mulf %174, %178 : vector<16x32xf32>
    %180 = vector.broadcast %159 : vector<1x32xf32> to vector<16x32xf32>
    %181 = arith.mulf %179, %180 : vector<16x32xf32>
    %182 = vector.broadcast %161 : vector<1x32xf32> to vector<16x32xf32>
    %183 = arith.addf %181, %182 : vector<16x32xf32>
    %c1 = arith.constant 1 : index
    %c0_84 = arith.constant 0 : index
    %c0_85 = arith.constant 0 : index
    %184 = vector.load %arg7[%c1, %c0_84, %c0_85] : memref<2x32x96xbf16, #tpu.memory_space<vmem>>, vector<1x32x96xbf16>
    %185 = vector.shape_cast %184 : vector<1x32x96xbf16> to vector<32x96xbf16>
    %c1_86 = arith.constant 1 : index
    %c0_87 = arith.constant 0 : index
    %c0_88 = arith.constant 0 : index
    %186 = vector.load %arg8[%c1_86, %c0_87, %c0_88] : memref<2x1x96xf32, #tpu.memory_space<vmem>>, vector<1x1x96xf32>
    %187 = vector.shape_cast %186 : vector<1x1x96xf32> to vector<1x96xf32>
    %188 = arith.truncf %183 : vector<16x32xf32> to vector<16x32xbf16>
    %cst_89 = arith.constant dense<0.000000e+00> : vector<16x96xf32>
    %189 = tpu.matmul %188, %185, %cst_89 {dimension_numbers = #tpu.dot_dimension_numbers<[1], [0], [0], [1], [0, 0, 1, 1], [], []>} : vector<16x32xbf16>, vector<32x96xbf16>, vector<16x96xf32> -> vector<16x96xf32>
    %190 = vector.broadcast %187 : vector<1x96xf32> to vector<16x96xf32>
    %191 = arith.addf %189, %190 : vector<16x96xf32>
    %192 = vector.extract_strided_slice %191 {offsets = [0, 0], sizes = [16, 16], strides = [1, 1]} : vector<16x96xf32> to vector<16x16xf32>
    %193 = vector.extract_strided_slice %191 {offsets = [0, 32], sizes = [16, 16], strides = [1, 1]} : vector<16x96xf32> to vector<16x16xf32>
    %194 = vector.extract_strided_slice %191 {offsets = [0, 64], sizes = [16, 16], strides = [1, 1]} : vector<16x96xf32> to vector<16x16xf32>
    %195 = arith.truncf %192 : vector<16x16xf32> to vector<16x16xbf16>
    %196 = arith.truncf %193 : vector<16x16xf32> to vector<16x16xbf16>
    %cst_90 = arith.constant dense<0.000000e+00> : vector<16x16xf32>
    %197 = tpu.matmul %195, %196, %cst_90 {dimension_numbers = #tpu.dot_dimension_numbers<[1], [1], [0], [0], [0, 0, 1, 0], [], []>} : vector<16x16xbf16>, vector<16x16xbf16>, vector<16x16xf32> -> vector<16x16xf32>
    %cst_91 = arith.constant 2.500000e-01 : f32
    %198 = vector.broadcast %cst_91 : f32 to vector<16x16xf32>
    %199 = arith.mulf %197, %198 : vector<16x16xf32>
    %200 = arith.addf %199, %39 : vector<16x16xf32>
    %cst_92 = arith.constant dense<0xFF800000> : vector<16xf32>
    %201 = vector.multi_reduction <maximumf>, %200, %cst_92 [1] : vector<16x16xf32> to vector<16xf32>
    %202 = vector.shape_cast %201 : vector<16xf32> to vector<16x1xf32>
    %203 = vector.broadcast %202 : vector<16x1xf32> to vector<16x16xf32>
    %204 = arith.subf %200, %203 : vector<16x16xf32>
    %205 = math.exp %204 : vector<16x16xf32>
    %cst_93 = arith.constant dense<0.000000e+00> : vector<16xf32>
    %206 = vector.multi_reduction <add>, %205, %cst_93 [1] : vector<16x16xf32> to vector<16xf32>
    %207 = vector.shape_cast %206 : vector<16xf32> to vector<16x1xf32>
    %208 = tpu.reciprocal %207 {approx = true} : vector<16x1xf32> -> vector<16x1xf32>
    %209 = vector.broadcast %208 : vector<16x1xf32> to vector<16x16xf32>
    %210 = arith.mulf %205, %209 : vector<16x16xf32>
    %211 = arith.truncf %210 : vector<16x16xf32> to vector<16x16xbf16>
    %212 = arith.truncf %194 : vector<16x16xf32> to vector<16x16xbf16>
    %cst_94 = arith.constant dense<0.000000e+00> : vector<16x16xf32>
    %213 = tpu.matmul %211, %212, %cst_94 {dimension_numbers = #tpu.dot_dimension_numbers<[1], [0], [0], [1], [0, 0, 1, 1], [], []>} : vector<16x16xbf16>, vector<16x16xbf16>, vector<16x16xf32> -> vector<16x16xf32>
    %214 = vector.extract_strided_slice %191 {offsets = [0, 16], sizes = [16, 16], strides = [1, 1]} : vector<16x96xf32> to vector<16x16xf32>
    %215 = vector.extract_strided_slice %191 {offsets = [0, 48], sizes = [16, 16], strides = [1, 1]} : vector<16x96xf32> to vector<16x16xf32>
    %216 = vector.extract_strided_slice %191 {offsets = [0, 80], sizes = [16, 16], strides = [1, 1]} : vector<16x96xf32> to vector<16x16xf32>
    %217 = arith.truncf %214 : vector<16x16xf32> to vector<16x16xbf16>
    %218 = arith.truncf %215 : vector<16x16xf32> to vector<16x16xbf16>
    %cst_95 = arith.constant dense<0.000000e+00> : vector<16x16xf32>
    %219 = tpu.matmul %217, %218, %cst_95 {dimension_numbers = #tpu.dot_dimension_numbers<[1], [1], [0], [0], [0, 0, 1, 0], [], []>} : vector<16x16xbf16>, vector<16x16xbf16>, vector<16x16xf32> -> vector<16x16xf32>
    %cst_96 = arith.constant 2.500000e-01 : f32
    %220 = vector.broadcast %cst_96 : f32 to vector<16x16xf32>
    %221 = arith.mulf %219, %220 : vector<16x16xf32>
    %222 = arith.addf %221, %39 : vector<16x16xf32>
    %cst_97 = arith.constant dense<0xFF800000> : vector<16xf32>
    %223 = vector.multi_reduction <maximumf>, %222, %cst_97 [1] : vector<16x16xf32> to vector<16xf32>
    %224 = vector.shape_cast %223 : vector<16xf32> to vector<16x1xf32>
    %225 = vector.broadcast %224 : vector<16x1xf32> to vector<16x16xf32>
    %226 = arith.subf %222, %225 : vector<16x16xf32>
    %227 = math.exp %226 : vector<16x16xf32>
    %cst_98 = arith.constant dense<0.000000e+00> : vector<16xf32>
    %228 = vector.multi_reduction <add>, %227, %cst_98 [1] : vector<16x16xf32> to vector<16xf32>
    %229 = vector.shape_cast %228 : vector<16xf32> to vector<16x1xf32>
    %230 = tpu.reciprocal %229 {approx = true} : vector<16x1xf32> -> vector<16x1xf32>
    %231 = vector.broadcast %230 : vector<16x1xf32> to vector<16x16xf32>
    %232 = arith.mulf %227, %231 : vector<16x16xf32>
    %233 = arith.truncf %232 : vector<16x16xf32> to vector<16x16xbf16>
    %234 = arith.truncf %216 : vector<16x16xf32> to vector<16x16xbf16>
    %cst_99 = arith.constant dense<0.000000e+00> : vector<16x16xf32>
    %235 = tpu.matmul %233, %234, %cst_99 {dimension_numbers = #tpu.dot_dimension_numbers<[1], [0], [0], [1], [0, 0, 1, 1], [], []>} : vector<16x16xbf16>, vector<16x16xbf16>, vector<16x16xf32> -> vector<16x16xf32>
    %236 = tpu.concatenate %213, %235 in 1 : vector<16x16xf32>, vector<16x16xf32> -> vector<16x32xf32>
    %c1_100 = arith.constant 1 : index
    %c0_101 = arith.constant 0 : index
    %c0_102 = arith.constant 0 : index
    %237 = vector.load %arg9[%c1_100, %c0_101, %c0_102] : memref<2x32x32xbf16, #tpu.memory_space<vmem>>, vector<1x32x32xbf16>
    %238 = vector.shape_cast %237 : vector<1x32x32xbf16> to vector<32x32xbf16>
    %c1_103 = arith.constant 1 : index
    %c0_104 = arith.constant 0 : index
    %c0_105 = arith.constant 0 : index
    %239 = vector.load %arg10[%c1_103, %c0_104, %c0_105] : memref<2x1x32xf32, #tpu.memory_space<vmem>>, vector<1x1x32xf32>
    %240 = vector.shape_cast %239 : vector<1x1x32xf32> to vector<1x32xf32>
    %241 = arith.truncf %236 : vector<16x32xf32> to vector<16x32xbf16>
    %cst_106 = arith.constant dense<0.000000e+00> : vector<16x32xf32>
    %242 = tpu.matmul %241, %238, %cst_106 {dimension_numbers = #tpu.dot_dimension_numbers<[1], [0], [0], [1], [0, 0, 1, 1], [], []>} : vector<16x32xbf16>, vector<32x32xbf16>, vector<16x32xf32> -> vector<16x32xf32>
    %243 = vector.broadcast %240 : vector<1x32xf32> to vector<16x32xf32>
    %244 = arith.addf %242, %243 : vector<16x32xf32>
    %245 = arith.addf %244, %183 : vector<16x32xf32>
    %c1_107 = arith.constant 1 : index
    %c0_108 = arith.constant 0 : index
    %c0_109 = arith.constant 0 : index
    %246 = vector.load %arg11[%c1_107, %c0_108, %c0_109] : memref<2x1x32xf32, #tpu.memory_space<vmem>>, vector<1x1x32xf32>
    %247 = vector.shape_cast %246 : vector<1x1x32xf32> to vector<1x32xf32>
    %c1_110 = arith.constant 1 : index
    %c0_111 = arith.constant 0 : index
    %c0_112 = arith.constant 0 : index
    %248 = vector.load %arg12[%c1_110, %c0_111, %c0_112] : memref<2x1x32xf32, #tpu.memory_space<vmem>>, vector<1x1x32xf32>
    %249 = vector.shape_cast %248 : vector<1x1x32xf32> to vector<1x32xf32>
    %cst_113 = arith.constant dense<0.000000e+00> : vector<16xf32>
    %250 = vector.multi_reduction <add>, %245, %cst_113 [1] : vector<16x32xf32> to vector<16xf32>
    %251 = vector.shape_cast %250 : vector<16xf32> to vector<16x1xf32>
    %cst_114 = arith.constant 3.200000e+01 : f32
    %252 = vector.broadcast %cst_114 : f32 to vector<16x1xf32>
    %253 = arith.divf %251, %252 : vector<16x1xf32>
    %254 = vector.broadcast %253 : vector<16x1xf32> to vector<16x32xf32>
    %255 = arith.subf %245, %254 : vector<16x32xf32>
    %256 = arith.mulf %255, %255 : vector<16x32xf32>
    %cst_115 = arith.constant dense<0.000000e+00> : vector<16xf32>
    %257 = vector.multi_reduction <add>, %256, %cst_115 [1] : vector<16x32xf32> to vector<16xf32>
    %258 = vector.shape_cast %257 : vector<16xf32> to vector<16x1xf32>
    %cst_116 = arith.constant 3.200000e+01 : f32
    %259 = vector.broadcast %cst_116 : f32 to vector<16x1xf32>
    %260 = arith.divf %258, %259 : vector<16x1xf32>
    %261 = vector.broadcast %253 : vector<16x1xf32> to vector<16x32xf32>
    %262 = arith.subf %245, %261 : vector<16x32xf32>
    %cst_117 = arith.constant 9.99999996E-13 : f32
    %263 = vector.broadcast %cst_117 : f32 to vector<16x1xf32>
    %264 = arith.addf %260, %263 : vector<16x1xf32>
    %265 = math.rsqrt %264 : vector<16x1xf32>
    %266 = vector.broadcast %265 : vector<16x1xf32> to vector<16x32xf32>
    %267 = arith.mulf %262, %266 : vector<16x32xf32>
    %268 = vector.broadcast %247 : vector<1x32xf32> to vector<16x32xf32>
    %269 = arith.mulf %267, %268 : vector<16x32xf32>
    %270 = vector.broadcast %249 : vector<1x32xf32> to vector<16x32xf32>
    %271 = arith.addf %269, %270 : vector<16x32xf32>
    %c1_118 = arith.constant 1 : index
    %c0_119 = arith.constant 0 : index
    %c0_120 = arith.constant 0 : index
    %272 = vector.load %arg13[%c1_118, %c0_119, %c0_120] : memref<2x32x128xbf16, #tpu.memory_space<vmem>>, vector<1x32x128xbf16>
    %273 = vector.shape_cast %272 : vector<1x32x128xbf16> to vector<32x128xbf16>
    %c1_121 = arith.constant 1 : index
    %c0_122 = arith.constant 0 : index
    %c0_123 = arith.constant 0 : index
    %274 = vector.load %arg14[%c1_121, %c0_122, %c0_123] : memref<2x1x128xf32, #tpu.memory_space<vmem>>, vector<1x1x128xf32>
    %275 = vector.shape_cast %274 : vector<1x1x128xf32> to vector<1x128xf32>
    %276 = arith.truncf %271 : vector<16x32xf32> to vector<16x32xbf16>
    %cst_124 = arith.constant dense<0.000000e+00> : vector<16x128xf32>
    %277 = tpu.matmul %276, %273, %cst_124 {dimension_numbers = #tpu.dot_dimension_numbers<[1], [0], [0], [1], [0, 0, 1, 1], [], []>} : vector<16x32xbf16>, vector<32x128xbf16>, vector<16x128xf32> -> vector<16x128xf32>
    %278 = vector.broadcast %275 : vector<1x128xf32> to vector<16x128xf32>
    %279 = arith.addf %277, %278 : vector<16x128xf32>
    %280 = arith.mulf %279, %279 : vector<16x128xf32>
    %281 = arith.mulf %279, %280 : vector<16x128xf32>
    %cst_125 = arith.constant 4.471500e-02 : f32
    %282 = vector.broadcast %cst_125 : f32 to vector<16x128xf32>
    %283 = arith.mulf %282, %281 : vector<16x128xf32>
    %284 = arith.addf %279, %283 : vector<16x128xf32>
    %cst_126 = arith.constant 0.797884583 : f32
    %285 = vector.broadcast %cst_126 : f32 to vector<16x128xf32>
    %286 = arith.mulf %285, %284 : vector<16x128xf32>
    %287 = math.tanh %286 : vector<16x128xf32>
    %cst_127 = arith.constant 1.000000e+00 : f32
    %288 = vector.broadcast %cst_127 : f32 to vector<16x128xf32>
    %289 = arith.addf %288, %287 : vector<16x128xf32>
    %cst_128 = arith.constant 5.000000e-01 : f32
    %290 = vector.broadcast %cst_128 : f32 to vector<16x128xf32>
    %291 = arith.mulf %290, %289 : vector<16x128xf32>
    %292 = arith.mulf %279, %291 : vector<16x128xf32>
    %c1_129 = arith.constant 1 : index
    %c0_130 = arith.constant 0 : index
    %c0_131 = arith.constant 0 : index
    %293 = vector.load %arg15[%c1_129, %c0_130, %c0_131] : memref<2x128x32xbf16, #tpu.memory_space<vmem>>, vector<1x128x32xbf16>
    %294 = vector.shape_cast %293 : vector<1x128x32xbf16> to vector<128x32xbf16>
    %c1_132 = arith.constant 1 : index
    %c0_133 = arith.constant 0 : index
    %c0_134 = arith.constant 0 : index
    %295 = vector.load %arg16[%c1_132, %c0_133, %c0_134] : memref<2x1x32xf32, #tpu.memory_space<vmem>>, vector<1x1x32xf32>
    %296 = vector.shape_cast %295 : vector<1x1x32xf32> to vector<1x32xf32>
    %297 = arith.truncf %292 : vector<16x128xf32> to vector<16x128xbf16>
    %cst_135 = arith.constant dense<0.000000e+00> : vector<16x32xf32>
    %298 = tpu.matmul %297, %294, %cst_135 {dimension_numbers = #tpu.dot_dimension_numbers<[1], [0], [0], [1], [0, 0, 1, 1], [], []>} : vector<16x128xbf16>, vector<128x32xbf16>, vector<16x32xf32> -> vector<16x32xf32>
    %299 = vector.broadcast %296 : vector<1x32xf32> to vector<16x32xf32>
    %300 = arith.addf %298, %299 : vector<16x32xf32>
    %301 = arith.addf %300, %271 : vector<16x32xf32>
    %c1_136 = arith.constant 1 : index
    %c0_137 = arith.constant 0 : index
    %c0_138 = arith.constant 0 : index
    %302 = vector.load %arg17[%c1_136, %c0_137, %c0_138] : memref<2x1x32xf32, #tpu.memory_space<vmem>>, vector<1x1x32xf32>
    %303 = vector.shape_cast %302 : vector<1x1x32xf32> to vector<1x32xf32>
    %c1_139 = arith.constant 1 : index
    %c0_140 = arith.constant 0 : index
    %c0_141 = arith.constant 0 : index
    %304 = vector.load %arg18[%c1_139, %c0_140, %c0_141] : memref<2x1x32xf32, #tpu.memory_space<vmem>>, vector<1x1x32xf32>
    %305 = vector.shape_cast %304 : vector<1x1x32xf32> to vector<1x32xf32>
    %cst_142 = arith.constant dense<0.000000e+00> : vector<16xf32>
    %306 = vector.multi_reduction <add>, %301, %cst_142 [1] : vector<16x32xf32> to vector<16xf32>
    %307 = vector.shape_cast %306 : vector<16xf32> to vector<16x1xf32>
    %cst_143 = arith.constant 3.200000e+01 : f32
    %308 = vector.broadcast %cst_143 : f32 to vector<16x1xf32>
    %309 = arith.divf %307, %308 : vector<16x1xf32>
    %310 = vector.broadcast %309 : vector<16x1xf32> to vector<16x32xf32>
    %311 = arith.subf %301, %310 : vector<16x32xf32>
    %312 = arith.mulf %311, %311 : vector<16x32xf32>
    %cst_144 = arith.constant dense<0.000000e+00> : vector<16xf32>
    %313 = vector.multi_reduction <add>, %312, %cst_144 [1] : vector<16x32xf32> to vector<16xf32>
    %314 = vector.shape_cast %313 : vector<16xf32> to vector<16x1xf32>
    %cst_145 = arith.constant 3.200000e+01 : f32
    %315 = vector.broadcast %cst_145 : f32 to vector<16x1xf32>
    %316 = arith.divf %314, %315 : vector<16x1xf32>
    %317 = vector.broadcast %309 : vector<16x1xf32> to vector<16x32xf32>
    %318 = arith.subf %301, %317 : vector<16x32xf32>
    %cst_146 = arith.constant 9.99999996E-13 : f32
    %319 = vector.broadcast %cst_146 : f32 to vector<16x1xf32>
    %320 = arith.addf %316, %319 : vector<16x1xf32>
    %321 = math.rsqrt %320 : vector<16x1xf32>
    %322 = vector.broadcast %321 : vector<16x1xf32> to vector<16x32xf32>
    %323 = arith.mulf %318, %322 : vector<16x32xf32>
    %324 = vector.broadcast %303 : vector<1x32xf32> to vector<16x32xf32>
    %325 = arith.mulf %323, %324 : vector<16x32xf32>
    %326 = vector.broadcast %305 : vector<1x32xf32> to vector<16x32xf32>
    %327 = arith.addf %325, %326 : vector<16x32xf32>
    %c0_147 = arith.constant 0 : index
    %c0_148 = arith.constant 0 : index
    %328 = vector.load %arg23[%c0_147, %c0_148] : memref<16x32xf32, #tpu.memory_space<vmem>>, vector<16x32xf32>
    tpu.vector_store %arg23[%c0_147, %c0_148], %327 {strides = array<i32>} : memref<16x32xf32, #tpu.memory_space<vmem>>, vector<16x32xf32>,
    %329 = vector.extract_strided_slice %327 {offsets = [0, 0], sizes = [1, 32], strides = [1, 1]} : vector<16x32xf32> to vector<1x32xf32>
    %330 = vector.extract_strided_slice %327 {offsets = [8, 0], sizes = [1, 32], strides = [1, 1]} : vector<16x32xf32> to vector<1x32xf32>
    %331 = tpu.concatenate %329, %330 in 0 : vector<1x32xf32>, vector<1x32xf32> -> vector<2x32xf32>
    %c0_149 = arith.constant 0 : index
    %c0_150 = arith.constant 0 : index
    %332 = vector.load %arg19[%c0_149, %c0_150] : memref<32x32xbf16, #tpu.memory_space<vmem>>, vector<32x32xbf16>
    %c0_151 = arith.constant 0 : index
    %c0_152 = arith.constant 0 : index
    %333 = vector.load %arg20[%c0_151, %c0_152] : memref<1x32xf32, #tpu.memory_space<vmem>>, vector<1x32xf32>
    %334 = arith.truncf %331 : vector<2x32xf32> to vector<2x32xbf16>
    %cst_153 = arith.constant dense<0.000000e+00> : vector<2x32xf32>
    %335 = tpu.matmul %334, %332, %cst_153 {dimension_numbers = #tpu.dot_dimension_numbers<[1], [0], [0], [1], [0, 0, 1, 1], [], []>} : vector<2x32xbf16>, vector<32x32xbf16>, vector<2x32xf32> -> vector<2x32xf32>
    %336 = vector.broadcast %333 : vector<1x32xf32> to vector<2x32xf32>
    %337 = arith.addf %335, %336 : vector<2x32xf32>
    %338 = math.tanh %337 : vector<2x32xf32>
    %c0_154 = arith.constant 0 : index
    %c0_155 = arith.constant 0 : index
    %339 = vector.load %arg24[%c0_154, %c0_155] : memref<2x32xf32, #tpu.memory_space<vmem>>, vector<2x32xf32>
    tpu.vector_store %arg24[%c0_154, %c0_155], %338 {strides = array<i32>} : memref<2x32xf32, #tpu.memory_space<vmem>>, vector<2x32xf32>,
    %c0_156 = arith.constant 0 : index
    %c0_157 = arith.constant 0 : index
    %340 = vector.load %arg21[%c0_156, %c0_157] : memref<32x128xbf16, #tpu.memory_space<vmem>>, vector<32x128xbf16>
    %c0_158 = arith.constant 0 : index
    %c0_159 = arith.constant 0 : index
    %341 = vector.load %arg22[%c0_158, %c0_159] : memref<1x128xf32, #tpu.memory_space<vmem>>, vector<1x128xf32>
    %342 = arith.truncf %338 : vector<2x32xf32> to vector<2x32xbf16>
    %cst_160 = arith.constant dense<0.000000e+00> : vector<2x128xf32>
    %343 = tpu.matmul %342, %340, %cst_160 {dimension_numbers = #tpu.dot_dimension_numbers<[1], [0], [0], [1], [0, 0, 1, 1], [], []>} : vector<2x32xbf16>, vector<32x128xbf16>, vector<2x128xf32> -> vector<2x128xf32>
    %344 = vector.broadcast %341 : vector<1x128xf32> to vector<2x128xf32>
    %345 = arith.addf %343, %344 : vector<2x128xf32>
    %c0_161 = arith.constant 0 : index
    %c0_162 = arith.constant 0 : index
    %346 = vector.load %arg25[%c0_161, %c0_162] : memref<2x128xf32, #tpu.memory_space<vmem>>, vector<2x128xf32>
    tpu.vector_store %arg25[%c0_161, %c0_162], %345 {strides = array<i32>} : memref<2x128xf32, #tpu.memory_space<vmem>>, vector<2x128xf32>,
    return
  }
}

</mosaic_0001>

<bundles_post_ra>
// kernel: mul.8
= control target key start
LH: loop header
LB: loop body
LE: loop exit
PB: predicated region body
PF: predicated region fallthrough
CT: control target
= control target key end

     0   :  { %vm7_vm0 = vcmask 64512   ;;  %vm13_vm1 = vcmask 130112   ;;  %s39_s0 = inlined_call_operand.vmem [shape: f32[2,8], index: 0, kind: input, shape index: {}]   ;;  %s40_s1 = inlined_call_operand.vmem [shape: f32[16], index: 1, kind: output, shape index: {}]  }
   0x1   :  { %v4_v0 = vld [vmem:[%s39_s0] sm:$0x3]  ;;  %s22_s0 = smov 8  }
   0x2   :  { %5 = vst [vmem:[#allocation1] sm:$0x3] %v4_v0 }
   0x9   :  { %v10_v1 = vld [vmem:[#allocation1 + $0x1] sm:$0x1]   ;;  %v6_v2 = vld [vmem:[#allocation1] sm:$0x1]  }
   0xa   :  { %11 = vrot.lane.b32.xlu0 %v10_v1, %s22_s0  ;;  %8 = vst.msk [vmem:[#allocation0] sm:$0x1] %vm7_vm0, %v6_v2  }
  0x7c   :  { %v12_v3 = vpop.permute.xlu0 %11  }
  0x7d   :  { %14 = vst.msk [vmem:[#allocation0] sm:$0x1] %vm13_vm1, %v12_v3  }
  0x84   :  { %v17_v4 = vld [vmem:[#allocation0] sm:$0x1] }
  0x85   :  { %20 = vst [vmem:[%s40_s1] sm:$0x1] %v17_v4 }

// kernel: bert_forward.1
= control target key start
LH: loop header
LB: loop body
LE: loop exit
PB: predicated region body
PF: predicated region fallthrough
CT: control target
= control target key end

     0   :  { %s2225_s0 = inlined_call_operand.vmem [shape: s32[16,1], index: 0, kind: input, shape index: {}]   ;;  %s2226_s1 = inlined_call_operand.vmem [shape: f32[16,16], index: 1, kind: input, shape index: {}]   ;;  %s2227_s2 = inlined_call_operand.vmem [shape: bf16[64,32], index: 2, kind: input, shape index: {}]   ;;  %s2228_s3 = inlined_call_operand.vmem [shape: f32[16,32], index: 3, kind: input, shape index: {}]   ;;  %s2229_s4 = inlined_call_operand.vmem [shape: f32[1,32], index: 4, kind: input, shape index: {}]   ;;  %s2230_s5 = inlined_call_operand.vmem [shape: f32[1,32], index: 5, kind: input, shape index: {}]   ;;  %s2231_s6 = inlined_call_operand.vmem [shape: f32[1,32], index: 6, kind: input, shape index: {}]   ;;  %s2232_s7 = inlined_call_operand.vmem [shape: bf16[2,32,96], index: 7, kind: input, shape index: {}]   ;;  %s2233_s8 = inlined_call_operand.vmem [shape: f32[2,1,96], index: 8, kind: input, shape index: {}]   ;;  %s2234_s9 = inlined_call_operand.vmem [shape: bf16[2,32,32], index: 9, kind: input, shape index: {}]   ;;  %s2235_s10 = inlined_call_operand.vmem [shape: f32[2,1,32], index: 10, kind: input, shape index: {}]   ;;  %s2236_s11 = inlined_call_operand.vmem [shape: f32[2,1,32], index: 11, kind: input, shape index: {}]   ;;  %s2237_s12 = inlined_call_operand.vmem [shape: f32[2,1,32], index: 12, kind: input, shape index: {}]   ;;  %s2238_s13 = inlined_call_operand.vmem [shape: bf16[2,32,128], index: 13, kind: input, shape index: {}]   ;;  %s2239_s14 = inlined_call_operand.vmem [shape: f32[2,1,128], index: 14, kind: input, shape index: {}]   ;;  %s2240_s15 = inlined_call_operand.vmem [shape: bf16[2,128,32], index: 15, kind: input, shape index: {}]   ;;  %s2241_s16 = inlined_call_operand.vmem [shape: f32[2,1,32], index: 16, kind: input, shape index: {}]   ;;  %s2242_s17 = inlined_call_operand.vmem [shape: f32[2,1,32], index: 17, kind: input, shape index: {}]   ;;  %s2243_s18 = inlined_call_operand.vmem [shape: f32[2,1,32], index: 18, kind: input, shape index: {}]   ;;  %s2244_s19 = inlined_call_operand.vmem [shape: bf16[32,32], index: 19, kind: input, shape index: {}]   ;;  %s2245_s20 = inlined_call_operand.vmem [shape: f32[1,32], index: 20, kind: input, shape index: {}]   ;;  %s2246_s21 = inlined_call_operand.vmem [shape: bf16[32,128], index: 21, kind: input, shape index: {}]   ;;  %s2247_s22 = inlined_call_operand.vmem [shape: f32[1,128], index: 22, kind: input, shape index: {}]   ;;  %s2248_s23 = inlined_call_operand.hbm [shape: f32[16,32], index: 23, kind: output, shape index: {0}]   ;;  %s2249_s24 = inlined_call_operand.hbm [shape: f32[2,32], index: 24, kind: output, shape index: {1}]   ;;  %s2250_s25 = inlined_call_operand.hbm [shape: f32[2,128], index: 25, kind: output, shape index: {2}]  }
   0x1   :  { %2262 = sst [smem:[#allocation9_spill]] %s2225_s0 }
   0x2   :  { %2263 = sst [smem:[#allocation10_spill]] %s2226_s1 }
   0x3   :  { %2264 = sst [smem:[#allocation11_spill]] %s2227_s2 }
   0x4   :  { %2265 = sst [smem:[#allocation12_spill]] %s2228_s3 }
   0x5   :  { %2266 = sst [smem:[#allocation13_spill]] %s2229_s4 }
   0x6   :  { %2267 = sst [smem:[#allocation14_spill]] %s2230_s5 }
   0x7   :  { %2268 = sst [smem:[#allocation15_spill]] %s2231_s6 }
   0x8   :  { %2269 = sst [smem:[#allocation16_spill]] %s2232_s7 }
   0x9   :  { %2270 = sst [smem:[#allocation17_spill]] %s2233_s8 }
   0xa   :  { %2271 = sst [smem:[#allocation18_spill]] %s2234_s9 }
   0xb   :  { %31 = vsyncpa [#allocation3], 0  ;;  %s2272_s6 = sld [smem:[#allocation9_spill]]  ;;  %v1751_v2 = vmov 0  }
   0xc   :  { %s2273_s3 = sld [smem:[#allocation11_spill]]  ;;  %1579 = vset.pattern.permute.xlu0 %v1751_v2 }
  0x11   :  { %v80_v0 = vld [vmem:[%s2272_s6] sm:$0xff]  ;;  %v81_v3 = vld [vmem:[%s2272_s6 + $0x8] sm:$0xff] }
  0x12   :  { %v1532_v1 = vld [vmem:[%s2273_s3 + $0x18] sm:$0xff]  ;;  %85 = vperm.xlu0 %1579, %v80_v0  }
  0x13   :  { %137 = vmatpush.bf16.msra.mxu0 %v1532_v1 }
  0x14   :  { %32 = vsyncpa [#allocation5], 0  ;;  %v1531_v4 = vld [vmem:[%s2273_s3 + $0x10] sm:$0xff]  ;;  %v1530_v5 = vld [vmem:[%s2273_s3 + $0x8] sm:$0xff]  ;;  %v82_v7 = vlaneseq  ;;  %v1752_v11 = vmov 0.0   ;;  %vm129_vm2 = vcmask 523264  }
  0x15   :  { %v1529_v6 = vld [vmem:[%s2273_s3] sm:$0xff]  ;;  %s2274_s2 = sld [smem:[#allocation12_spill]]  ;;  %vm155_vm3 = vcmask 261120   ;;  %v1753_v26 = vmov 32.0   ;;  %s1754_s26 = smov 96   ;;  %vm261_vm11 = vcmask 130048  }
  0x16   :  { %v83_v9 = vand.u32 127, %v82_v7  ;;  %s2275_s7 = sld [smem:[#allocation13_spill]]  ;;  %1611 = vrcp.f32 %v1753_v26  ;;  %s2259_s5 = smov 64  }
  0x17   :  { %138 = vmatpush.bf16.msra.mxu0 %v1531_v4  ;;  %s2276_s27 = sld [smem:[#allocation16_spill]]  ;;  %s2261_s29 = smov 80  }
  0x18   :  { %s2277_s0 = sld [smem:[#allocation14_spill]]  ;;  %s2258_s1 = smov 16  }
  0x19   :  { %s2278_s6 = sld [smem:[#allocation15_spill]] }
  0x1a   :  { %88 = vperm.xlu0 %1579, %v81_v3   ;;  %s2279_s3 = sld [smem:[#allocation17_spill]] }
  0x1b   :  { %139 = vmatpush.bf16.msra.mxu0 %v1530_v5  ;;  %v103_v15 = vld [vmem:[%s2274_s2] sm:$0xff]  ;;  %v104_v21 = vld [vmem:[%s2274_s2 + $0x8] sm:$0xff]  ;;  %s2280_s4 = sld [smem:[#allocation10_spill]]  ;;  %s2260_s2 = smov 48  }
  0x1c   :  { %v1590_v16 = vld [vmem:[%s2275_s7] ss:$0 sm:$0xff]  ;;  %v1612_v27 = vpop.eup %1611  ;;  %s2281_s7 = sld [smem:[#allocation18_spill]] }
  0x1d   :  { %v163_v28 = vmul.f32 32.0, %v1612_v27  ;;  %vm167_vm4 = vweird.f32 %v1612_v27  ;;  %v1534_v43 = vld [vmem:[%s2276_s27 + $0x8] sm:$0xff]  ;;  %v1533_v45 = vld [vmem:[%s2276_s27] sm:$0xff] }
  0x1e   :  { %249 = vmatpush.bf16.msra.mxu1 %v1534_v43  ;;  %v1591_v0 = vld [vmem:[%s2277_s0] ss:$0 sm:$0xff]  ;;  %s1756_s0 = smov 112  }
  0x1f   :  { %140 = vmatpush.bf16.msra.mxu0 %v1529_v6  ;;  %v164_v29 = vsub.f32 1.0, %v163_v28  ;;  %v1592_v5 = vld [vmem:[%s2278_s6] ss:$0 sm:$0xff]  ;;  %s1289_s6 = sshll.u32 %s2248_s23, 4  ;;  %s1290_s6 = int_to_ptr.hbm [resolvable:$true] %s1289_s6 }
  0x21   :  { %v165_v30 = vmul.f32 %v1612_v27, %v164_v29 }
  0x22   :  { %250 = vmatpush.bf16.msra.mxu1 %v1533_v45 }
  0x23   :  { %v166_v31 = vadd.f32 %v1612_v27, %v165_v30 }
  0x25   :  { %v1924_v32 = vsel %vm167_vm4, %v1612_v27, %v166_v31 }
  0x84   :  { %v86_v8 = vpop.permute.xlu0 %85 }
  0x85   :  { %vm90_vm0 = vcmp.eq.s32.totalorder %v83_v9, %v86_v8 }
  0x86   :  { %v92_v12 = vsel %vm90_vm0, 1.0, %v1752_v11 }
  0x8c   :  { %v89_v10 = vpop.permute.xlu0 %88 }
  0x8d   :  { %vm91_vm1 = vcmp.eq.s32.totalorder %v83_v9, %v89_v10 }
  0x8e   :  { %v93_v13 = vsel %vm91_vm1, 1.0, %v1752_v11  ;;  %v1593_v11 = vld [vmem:[%s2279_s3] ss:$0 sm:$0xff] }
  0x8f   :  { %v94_v14 = vpack.c.bf16 %v93_v13, %v92_v12 }
  0x91   :  { %1348 = vmatmul.msk.bf16.vlgmr.msra.gmra.mxu0 %vm129_vm2, %v94_v14 }
 0x10e   :  { %v142_v17 = vpop.f32.mrf.mxu0 }
 0x10f   :  { %v143_v18 = vadd.f32 %v142_v17, %v103_v15 }
 0x111   :  { %v151_v19 = vadd.f32 %v1590_v16, %v143_v18 }
 0x113   :  { %v156_v20 = vsel %vm155_vm3, %v151_v19, 0.0 }
 0x114   :  { %157 = vadd.xlane.f32.xlu1 %v156_v20 }
 0x116   :  { %v144_v22 = vpop.f32.mrf.mxu0 }
 0x117   :  { %v145_v23 = vadd.f32 %v144_v22, %v104_v21 }
 0x119   :  { %v152_v24 = vadd.f32 %v1590_v16, %v145_v23 }
 0x11b   :  { %v159_v25 = vsel %vm155_vm3, %v152_v24, 0.0 }
 0x11c   :  { %160 = vadd.xlane.f32.xlu1 %v159_v25 }
 0x187   :  { %v158_v33 = vpop.xlane.xlu1 %157 }
 0x188   :  { %v169_v34 = vmul.f32 %v1924_v32, %v158_v33 }
 0x18a   :  { %v171_v35 = vsub.f32 %v151_v19, %v169_v34  ;;  %v1964_v19 = vld [vmem:[%s2280_s4] sm:$0xff] }
 0x18c   :  { %v173_v36 = vmul.f32 %v171_v35, %v171_v35 }
 0x18e   :  { %v175_v37 = vsel %vm155_vm3, %v173_v36, 0.0 }
 0x18f   :  { %176 = vadd.xlane.f32.xlu2 %v175_v37  ;;  %v161_v38 = vpop.xlane.xlu1 %160 }
 0x190   :  { %v170_v39 = vmul.f32 %v1924_v32, %v161_v38 }
 0x192   :  { %v172_v40 = vsub.f32 %v152_v24, %v170_v39  ;;  %v1971_v24 = vld [vmem:[%s2280_s4 + $0x8] sm:$0xff]  ;;  %s2285_s4 = smov 16  }
 0x194   :  { %v174_v41 = vmul.f32 %v172_v40, %v172_v40 }
 0x196   :  { %v178_v42 = vsel %vm155_vm3, %v174_v41, 0.0 }
 0x197   :  { %179 = vadd.xlane.f32.xlu2 %v178_v42 }
 0x202   :  { %v177_v44 = vpop.xlane.xlu2 %176 }
 0x203   :  { %v181_v46 = vmul.f32 %v177_v44, %v1924_v32 }
 0x205   :  { %v183_v47 = vadd.f32 1e-12, %v181_v46 }
 0x207   :  { %1613 = vrsqrt.f32 %v183_v47  ;;  %vm191_vm6 = vweird.f32 %v183_v47 }
 0x20a   :  { %v180_v48 = vpop.xlane.xlu2 %179 }
 0x20b   :  { %v182_v49 = vmul.f32 %v180_v48, %v1924_v32 }
 0x20d   :  { %v1614_v50 = vpop.eup %1613  ;;  %v184_v51 = vadd.f32 1e-12, %v182_v49 }
 0x20e   :  { %v186_v52 = vmul.f32 %v1614_v50, %v183_v47  ;;  %vm192_vm5 = vweird.f32 %v1614_v50 }
 0x20f   :  { %1615 = vrsqrt.f32 %v184_v51  ;;  %vm193_vm7 = vmor %vm191_vm6, %vm192_vm5  ;;  %vm201_vm9 = vweird.f32 %v184_v51 }
 0x210   :  { %v187_v53 = vmul.f32 %v1614_v50, %v186_v52 }
 0x212   :  { %v188_v54 = vmul.f32 0.5, %v187_v53 }
 0x214   :  { %v189_v55 = vsub.f32 1.5, %v188_v54 }
 0x215   :  { %v1616_v56 = vpop.eup %1615 }
 0x216   :  { %v190_v57 = vmul.f32 %v1614_v50, %v189_v55  ;;  %v196_v58 = vmul.f32 %v1616_v56, %v184_v51  ;;  %vm202_vm8 = vweird.f32 %v1616_v56 }
 0x217   :  { %vm203_vm10 = vmor %vm201_vm9, %vm202_vm8 }
 0x218   :  { %v197_v59 = vmul.f32 %v1616_v56, %v196_v58  ;;  %v194_v60 = vsel %vm193_vm7, %v1614_v50, %v190_v57 }
 0x219   :  { %v205_v63 = vmul.f32 %v194_v60, %v171_v35 }
 0x21a   :  { %v198_v61 = vmul.f32 0.5, %v197_v59 }
 0x21b   :  { %v210_v4 = vmul.f32 %v1591_v0, %v205_v63 }
 0x21c   :  { %v199_v62 = vsub.f32 1.5, %v198_v61 }
 0x21d   :  { %v1944_v7 = vadd.f32 %v1592_v5, %v210_v4 }
 0x21e   :  { %v200_v1 = vmul.f32 %v1616_v56, %v199_v62 }
 0x220   :  { %v204_v2 = vsel %vm203_vm10, %v1616_v56, %v200_v1 }
 0x221   :  { %v206_v3 = vmul.f32 %v204_v2, %v172_v40 }
 0x223   :  { %v211_v6 = vmul.f32 %v1591_v0, %v206_v3 }
 0x225   :  { %v1946_v8 = vadd.f32 %v1592_v5, %v211_v6 }
 0x227   :  { %v224_v9 = vpack.c.bf16 %v1946_v8, %v1944_v7 }
 0x229   :  { %1357 = vmatmul.msk.bf16.vlgmr.msra.gmra.mxu1 %vm155_vm3, %v224_v9 }
 0x2a6   :  { %v252_v10 = vpop.f32.mrf.mxu1 }
 0x2a7   :  { %v253_v13 = vadd.f32 %v1593_v11, %v252_v10 }
 0x2ae   :  { %v254_v12 = vpop.f32.mrf.mxu1 }
 0x2af   :  { %v255_v14 = vadd.f32 %v1593_v11, %v254_v12 }
 0x2b1   :  { %v1954_v15 = vpack.c.bf16 %v255_v14, %v253_v13 }
 0x2b3   :  { %259 = vrot.lane.b32.xlu0 %v1954_v15, %s1754_s26 }
 0x325   :  { %v260_v16 = vpop.permute.xlu0 %259 }
 0x326   :  { %v266_v17 = vsel %vm261_vm11, %v260_v16, 0 }
 0x327   :  { %275 = vmatpush.bf16.xpose.msra.mxu2 %v266_v17  ;;  %v1536_v17 = vld [vmem:[%s2281_s7 + $0x8] sm:$0xff] }
 0x32e   :  { %1358 = vmatmul.msk.bf16.vlgmr.msra.gmra.mxu2 %vm261_vm11, %v1954_v15 }
 0x32f   :  { %440 = vmatpush.bf16.msrb.mxu2 %v1536_v17  ;;  %v1546_v17 = vld [vmem:[%s2240_s15 + $0x38] sm:$0xff] }
 0x3b1   :  { %v277_v18 = vpop.f32.mrf.mxu2 }
 0x3b2   :  { %v282_v20 = vmul.f32 0.25, %v277_v18 }
 0x3b4   :  { %v284_v21 = vadd.f32 %v282_v20, %v1964_v19 }
 0x3b6   :  { %v286_v22 = vsel %vm261_vm11, %v284_v21, -inf }
 0x3b7   :  { %287 = vmax.xlane.f32.xlu1 %v286_v22 }
 0x3b9   :  { %v279_v23 = vpop.f32.mrf.mxu2 }
 0x3ba   :  { %v283_v25 = vmul.f32 0.25, %v279_v23 }
 0x3bc   :  { %v285_v26 = vadd.f32 %v283_v25, %v1971_v24 }
 0x3be   :  { %v289_v27 = vsel %vm261_vm11, %v285_v26, -inf }
 0x3bf   :  { %290 = vmax.xlane.f32.xlu2 %v289_v27 }
 0x3d7   :  { %309 = vrot.lane.b32.xlu2 %v1954_v15, %s2259_s5 }
 0x3df   :  { %329 = vrot.lane.b32.xlu2 %v1954_v15, %s1756_s0 }
 0x42a   :  { %v288_v28 = vpop.xlane.xlu1 %287 }
 0x42b   :  { %v292_v29 = vsub.f32 %v284_v21, %v288_v28  ;;  %v1535_v21 = vld [vmem:[%s2281_s7] sm:$0xff] }
 0x42c   :  { %441 = vmatpush.bf16.msrb.mxu2 %v1535_v21  ;;  %v1542_v21 = vld [vmem:[%s2240_s15 + $0x18] sm:$0xff] }
 0x42d   :  { %v294_v30 = vmul.f32 1.442695, %v292_v29  ;;  %v1594_v29 = vld [vmem:[%s2235_s10] ss:$0 sm:$0xff] }
 0x42f   :  { %1617 = vpow2.f32 %v294_v30 }
 0x432   :  { %v291_v31 = vpop.xlane.xlu2 %290 }
 0x433   :  { %v293_v33 = vsub.f32 %v285_v26, %v291_v31 }
 0x435   :  { %v1618_v34 = vpop.eup %1617  ;;  %v296_v35 = vmul.f32 1.442695, %v293_v33 }
 0x436   :  { %v298_v36 = vsel %vm261_vm11, %v1618_v34, 0.0 }
 0x437   :  { %1619 = vpow2.f32 %v296_v35  ;;  %299 = vadd.xlane.f32.xlu0 %v298_v36 }
 0x43a   :  { %v310_v37 = vpop.permute.xlu2 %309 }
 0x43b   :  { %322 = vmatpush.bf16.msra.mxu3 %v310_v37 }
 0x43d   :  { %v1620_v38 = vpop.eup %1619 }
 0x43e   :  { %v301_v39 = vsel %vm261_vm11, %v1620_v38, 0.0 }
 0x43f   :  { %302 = vadd.xlane.f32.xlu1 %v301_v39 }
 0x442   :  { %v330_v49 = vpop.permute.xlu2 %329 }
 0x458   :  { %331 = vrot.lane.b32.xlu1 %v1954_v15, %s2261_s29  ;;  %s1762_s29 = smov 128  }
 0x4aa   :  { %v300_v40 = vpop.xlane.xlu0 %299 }
 0x4ab   :  { %1621 = vrcp.f32 %v300_v40 }
 0x4b1   :  { %v1622_v42 = vpop.eup %1621 }
 0x4b2   :  { %v303_v41 = vpop.xlane.xlu1 %302  ;;  %v306_v44 = vmul.f32 %v1622_v42, %v1618_v34 }
 0x4b3   :  { %1623 = vrcp.f32 %v303_v41 }
 0x4b9   :  { %v1624_v43 = vpop.eup %1623 }
 0x4ba   :  { %v307_v45 = vmul.f32 %v1624_v43, %v1620_v38 }
 0x4bc   :  { %v308_v46 = vpack.c.bf16 %v307_v45, %v306_v44 }
 0x4be   :  { %1359 = vmatmul.msk.bf16.vlgmr.msra.gmra.mxu3 %vm261_vm11, %v308_v46 }
 0x4ca   :  { %v332_v47 = vpop.permute.xlu1 %331 }
 0x4cb   :  { %v337_v48 = vsel %vm261_vm11, %v332_v47, 0 }
 0x4cc   :  { %346 = vmatpush.bf16.xpose.msrb.mxu3 %v337_v48 }
 0x4d3   :  { %1360 = vmatmul.msk.bf16.vlgmr.msrb.gmra.mxu3 %vm261_vm11, %v330_v49  ;;  %v1537_v49 = vld [vmem:[%s2238_s13] sm:$0xff] }
 0x541   :  { %v324_v50 = vpop.f32.mrf.mxu3 }
 0x549   :  { %v326_v51 = vpop.f32.mrf.mxu3 }
 0x556   :  { %v348_v52 = vpop.f32.mrf.mxu3 }
 0x557   :  { %v353_v53 = vmul.f32 0.25, %v348_v52 }
 0x559   :  { %v355_v54 = vadd.f32 %v353_v53, %v1964_v19 }
 0x55b   :  { %v357_v55 = vsel %vm261_vm11, %v355_v54, -inf }
 0x55c   :  { %358 = vmax.xlane.f32.xlu2 %v357_v55 }
 0x55e   :  { %v350_v56 = vpop.f32.mrf.mxu3 }
 0x55f   :  { %v354_v57 = vmul.f32 0.25, %v350_v56 }
 0x561   :  { %v356_v58 = vadd.f32 %v354_v57, %v1971_v24 }
 0x563   :  { %v360_v59 = vsel %vm261_vm11, %v356_v58, -inf }
 0x564   :  { %361 = vmax.xlane.f32.xlu1 %v360_v59 }
 0x5cf   :  { %v359_v60 = vpop.xlane.xlu2 %358 }
 0x5d0   :  { %v363_v61 = vsub.f32 %v355_v54, %v359_v60 }
 0x5d2   :  { %v365_v62 = vmul.f32 1.442695, %v363_v61 }
 0x5d4   :  { %1625 = vpow2.f32 %v365_v62 }
 0x5d7   :  { %v362_v63 = vpop.xlane.xlu1 %361 }
 0x5d8   :  { %v364_v0 = vsub.f32 %v356_v58, %v362_v63 }
 0x5da   :  { %v1626_v1 = vpop.eup %1625  ;;  %v367_v2 = vmul.f32 1.442695, %v364_v0 }
 0x5db   :  { %v369_v3 = vsel %vm261_vm11, %v1626_v1, 0.0 }
 0x5dc   :  { %1627 = vpow2.f32 %v367_v2  ;;  %370 = vadd.xlane.f32.xlu0 %v369_v3 }
 0x5e2   :  { %v1628_v4 = vpop.eup %1627 }
 0x5e3   :  { %v372_v5 = vsel %vm261_vm11, %v1628_v4, 0.0 }
 0x5e4   :  { %373 = vadd.xlane.f32.xlu0 %v372_v5 }
 0x5f8   :  { %380 = vrot.lane.b32.xlu0 %v1954_v15, %s2260_s2  ;;  %s2282_s2 = smov 80  }
 0x64f   :  { %v371_v6 = vpop.xlane.xlu0 %370 }
 0x657   :  { %v374_v9 = vpop.xlane.xlu0 %373 }
 0x658   :  { %1629 = vrcp.f32 %v374_v9 }
 0x659   :  { %1631 = vrcp.f32 %v371_v6 }
 0x65e   :  { %v1630_v10 = vpop.eup %1629 }
 0x65f   :  { %v1632_v11 = vpop.eup %1631  ;;  %v378_v12 = vmul.f32 %v1630_v10, %v1628_v4  ;;  %v1595_v4 = vld [vmem:[%s2236_s11] ss:$0 sm:$0xff] }
 0x660   :  { %v377_v13 = vmul.f32 %v1632_v11, %v1626_v1  ;;  %v1596_v11 = vld [vmem:[%s2237_s12] ss:$0 sm:$0xff] }
 0x662   :  { %v379_v16 = vpack.c.bf16 %v378_v12, %v377_v13 }
 0x66a   :  { %v381_v14 = vpop.permute.xlu0 %380 }
 0x66b   :  { %393 = vmatpush.bf16.msra.mxu3 %v381_v14 }
 0x66e   :  { %1361 = vmatmul.msk.bf16.vlgmr.msra.gmra.mxu3 %vm261_vm11, %v379_v16 }
 0x66f   :  { %631 = vmatpush.bf16.msrb.mxu3 %v1546_v17 }
 0x6f1   :  { %v395_v18 = vpop.f32.mrf.mxu3 }
 0x6f9   :  { %v397_v15 = vpop.f32.mrf.mxu3 }
 0x6fa   :  { %v1580_v20 = vpack.i.bf16 %v397_v15, %v395_v18  ;;  %v1545_v18 = vld [vmem:[%s2240_s15 + $0x30] sm:$0xff]  ;;  %v1544_v15 = vld [vmem:[%s2240_s15 + $0x28] sm:$0xff] }
 0x6fb   :  { %632 = vmatpush.bf16.msrb.mxu3 %v1545_v18 }
 0x6fc   :  { %1581 = vrot.lane.b32.xlu2 %v1580_v20, %s2258_s1  ;;  %v1543_v20 = vld [vmem:[%s2240_s15 + $0x20] sm:$0xff] }
 0x6ff   :  { %633 = vmatpush.bf16.msrb.mxu3 %v1544_v15 }
 0x703   :  { %634 = vmatpush.bf16.msrb.mxu3 %v1543_v20 }
 0x707   :  { %635 = vmatpush.bf16.msrb.mxu3 %v1542_v21 }
 0x756   :  { %v1582_v22 = vpop.permute.xlu2 %1581 }
 0x757   :  { %v1584_v23 = vunpack.i.h.bf16 %v1582_v22  ;;  %v1583_v25 = vunpack.i.l.bf16 %v1582_v22  ;;  %v1541_v22 = vld [vmem:[%s2240_s15 + $0x10] sm:$0xff] }
 0x758   :  { %636 = vmatpush.bf16.msrb.mxu3 %v1541_v22 }
 0x759   :  { %v409_v26 = vsel %vm261_vm11, %v326_v51, %v1584_v23  ;;  %v408_v27 = vsel %vm261_vm11, %v324_v50, %v1583_v25  ;;  %v1540_v23 = vld [vmem:[%s2240_s15 + $0x8] sm:$0xff]  ;;  %v1597_v25 = vld [vmem:[%s2239_s14] ss:$0 sm:$0xff] }
 0x75a   :  { %v415_v28 = vpack.c.bf16 %v409_v26, %v408_v27  ;;  %v1539_v26 = vld [vmem:[%s2240_s15] sm:$0xff] }
 0x75c   :  { %1370 = vmatmul.msk.bf16.vlgmr.msrb.gmra.mxu2 %vm155_vm3, %v415_v28  ;;  %637 = vmatpush.bf16.msrb.mxu3 %v1540_v23 }
 0x760   :  { %638 = vmatpush.bf16.msrb.mxu3 %v1539_v26 }
 0x7df   :  { %v443_v30 = vpop.f32.mrf.mxu2 }
 0x7e0   :  { %v444_v31 = vadd.f32 %v1594_v29, %v443_v30 }
 0x7e2   :  { %v448_v33 = vadd.f32 %v444_v31, %v1944_v7 }
 0x7e4   :  { %v452_v34 = vsel %vm155_vm3, %v448_v33, 0.0 }
 0x7e5   :  { %453 = vadd.xlane.f32.xlu1 %v452_v34 }
 0x7e7   :  { %v445_v35 = vpop.f32.mrf.mxu2 }
 0x7e8   :  { %v446_v36 = vadd.f32 %v1594_v29, %v445_v35 }
 0x7ea   :  { %v449_v37 = vadd.f32 %v446_v36, %v1946_v8  ;;  %v1538_v8 = vld [vmem:[%s2238_s13 + $0x8] sm:$0xff] }
 0x7eb   :  { %536 = vmatpush.bf16.msrb.mxu0 %v1538_v8 }
 0x7ec   :  { %v455_v38 = vsel %vm155_vm3, %v449_v37, 0.0 }
 0x7ed   :  { %456 = vadd.xlane.f32.xlu0 %v455_v38 }
 0x7ef   :  { %537 = vmatpush.bf16.msrb.mxu0 %v1537_v49  ;;  %v1598_v49 = vld [vmem:[%s2241_s16] ss:$0 sm:$0xff] }
 0x858   :  { %v454_v39 = vpop.xlane.xlu1 %453 }
 0x859   :  { %v458_v40 = vmul.f32 %v454_v39, %v1924_v32 }
 0x85b   :  { %v460_v41 = vsub.f32 %v448_v33, %v458_v40 }
 0x85d   :  { %v462_v42 = vmul.f32 %v460_v41, %v460_v41 }
 0x85f   :  { %v464_v43 = vsel %vm155_vm3, %v462_v42, 0.0 }
 0x860   :  { %v457_v44 = vpop.xlane.xlu0 %456  ;;  %465 = vadd.xlane.f32.xlu1 %v464_v43 }
 0x861   :  { %v459_v7 = vmul.f32 %v457_v44, %v1924_v32 }
 0x863   :  { %v461_v45 = vsub.f32 %v449_v37, %v459_v7 }
 0x865   :  { %v463_v46 = vmul.f32 %v461_v45, %v461_v45 }
 0x867   :  { %v467_v47 = vsel %vm155_vm3, %v463_v46, 0.0 }
 0x868   :  { %468 = vadd.xlane.f32.xlu1 %v467_v47 }
 0x8d3   :  { %v466_v48 = vpop.xlane.xlu1 %465 }
 0x8d4   :  { %v470_v50 = vmul.f32 %v466_v48, %v1924_v32 }
 0x8d6   :  { %v472_v51 = vadd.f32 1e-12, %v470_v50 }
 0x8d8   :  { %1633 = vrsqrt.f32 %v472_v51  ;;  %vm480_vm13 = vweird.f32 %v472_v51 }
 0x8db   :  { %v469_v52 = vpop.xlane.xlu1 %468 }
 0x8dc   :  { %v471_v53 = vmul.f32 %v469_v52, %v1924_v32 }
 0x8de   :  { %v1634_v54 = vpop.eup %1633  ;;  %v473_v55 = vadd.f32 1e-12, %v471_v53 }
 0x8df   :  { %v475_v56 = vmul.f32 %v1634_v54, %v472_v51  ;;  %vm481_vm12 = vweird.f32 %v1634_v54 }
 0x8e0   :  { %1635 = vrsqrt.f32 %v473_v55  ;;  %vm482_vm14 = vmor %vm480_vm13, %vm481_vm12  ;;  %vm490_vm0 = vweird.f32 %v473_v55 }
 0x8e1   :  { %v476_v57 = vmul.f32 %v1634_v54, %v475_v56 }
 0x8e3   :  { %v477_v58 = vmul.f32 0.5, %v476_v57 }
 0x8e5   :  { %v478_v59 = vsub.f32 1.5, %v477_v58 }
 0x8e6   :  { %v1636_v60 = vpop.eup %1635 }
 0x8e7   :  { %v479_v61 = vmul.f32 %v1634_v54, %v478_v59  ;;  %v485_v62 = vmul.f32 %v1636_v60, %v473_v55  ;;  %vm491_vm15 = vweird.f32 %v1636_v60 }
 0x8e8   :  { %vm492_vm1 = vmor %vm490_vm0, %vm491_vm15 }
 0x8e9   :  { %v486_v63 = vmul.f32 %v1636_v60, %v485_v62  ;;  %v483_v0 = vsel %vm482_vm14, %v1634_v54, %v479_v61 }
 0x8ea   :  { %v494_v3 = vmul.f32 %v483_v0, %v460_v41 }
 0x8eb   :  { %v487_v1 = vmul.f32 0.5, %v486_v63 }
 0x8ec   :  { %v499_v10 = vmul.f32 %v1595_v4, %v494_v3 }
 0x8ed   :  { %v488_v2 = vsub.f32 1.5, %v487_v1 }
 0x8ee   :  { %v504_v13 = vadd.f32 %v1596_v11, %v499_v10 }
 0x8ef   :  { %v489_v5 = vmul.f32 %v1636_v60, %v488_v2 }
 0x8f1   :  { %v493_v6 = vsel %vm492_vm1, %v1636_v60, %v489_v5 }
 0x8f2   :  { %v495_v9 = vmul.f32 %v493_v6, %v461_v45  ;;  %v1547_v6 = vld [vmem:[%s2276_s27 + $0x10] sm:$0xff] }
 0x8f4   :  { %v500_v12 = vmul.f32 %v1595_v4, %v495_v9  ;;  %v1548_v4 = vld [vmem:[%s2276_s27 + $0x18] sm:$0xff]  ;;  %s1760_s27 = smov [#allocation4]  }
 0x8f5   :  { %735 = vmatpush.bf16.msrb.mxu1 %v1548_v4  ;;  %s1301_s5 = sshll.u32 %s1760_s27, 4  ;;  %s1302_s5 = int_to_ptr.vmem [resolvable:$true] %s1301_s5 }
 0x8f6   :  { %v505_v14 = vadd.f32 %v1596_v11, %v500_v12 }
 0x8f8   :  { %v511_v16 = vpack.c.bf16 %v505_v14, %v504_v13 }
 0x8f9   :  { %736 = vmatpush.bf16.msrb.mxu1 %v1547_v6 }
 0x8fa   :  { %1379 = vmatmul.msk.bf16.vlgmr.msrb.gmra.mxu0 %vm155_vm3, %v511_v16 }
 0x977   :  { %v539_v27 = vpop.f32.mrf.mxu0 }
 0x978   :  { %v540_v28 = vadd.f32 %v1597_v25, %v539_v27 }
 0x97a   :  { %v544_v29 = vmul.f32 %v540_v28, %v540_v28 }
 0x97c   :  { %v546_v30 = vmul.f32 %v544_v29, %v540_v28  ;;  %v1599_v29 = vld [vmem:[%s2242_s17] ss:$0 sm:$0xff] }
 0x97e   :  { %v548_v31 = vmul.f32 0.044715, %v546_v30 }
 0x97f   :  { %v541_v33 = vpop.f32.mrf.mxu0 }
 0x980   :  { %v550_v34 = vadd.f32 %v548_v31, %v540_v28  ;;  %v542_v35 = vadd.f32 %v1597_v25, %v541_v33 }
 0x982   :  { %v552_v36 = vmul.f32 0.7978846, %v550_v34  ;;  %v545_v37 = vmul.f32 %v542_v35, %v542_v35 }
 0x984   :  { %v547_v38 = vmul.f32 %v545_v37, %v542_v35  ;;  %1637 = vtanh.f32 %v552_v36 }
 0x986   :  { %v549_v39 = vmul.f32 0.044715, %v547_v38 }
 0x988   :  { %v551_v40 = vadd.f32 %v549_v39, %v542_v35 }
 0x98a   :  { %v553_v41 = vmul.f32 0.7978846, %v551_v40  ;;  %v1638_v42 = vpop.eup %1637 }
 0x98b   :  { %v556_v43 = vadd.f32 1.0, %v1638_v42 }
 0x98c   :  { %1639 = vtanh.f32 %v553_v41  ;;  %v1601_v41 = vld [vmem:[%s2279_s3 + $0x1] ss:$0 sm:$0xff]  ;;  %s2283_s3 = smov 48  }
 0x98d   :  { %v558_v7 = vmul.f32 0.5, %v556_v43 }
 0x98f   :  { %v560_v47 = vmul.f32 %v558_v7, %v540_v28 }
 0x992   :  { %v1640_v44 = vpop.eup %1639 }
 0x993   :  { %v557_v45 = vadd.f32 1.0, %v1640_v44 }
 0x995   :  { %v559_v46 = vmul.f32 0.5, %v557_v45 }
 0x997   :  { %v561_v8 = vmul.f32 %v559_v46, %v542_v35  ;;  %v1600_v35 = vld [vmem:[%s2243_s18] ss:$0 sm:$0xff] }
 0x999   :  { %v579_v48 = vpack.c.bf16 %v561_v8, %v560_v47 }
 0x99b   :  { %639 = vmatmul.bf16.vlgmr.msrb.gmra.mxu3 %v579_v48 }
 0xa1e   :  { %v640_v50 = vpop.f32.mrf.mxu3 }
 0xa1f   :  { %v641_v51 = vadd.f32 %v1598_v49, %v640_v50 }
 0xa21   :  { %v645_v52 = vadd.f32 %v641_v51, %v504_v13 }
 0xa23   :  { %v649_v53 = vsel %vm155_vm3, %v645_v52, 0.0 }
 0xa24   :  { %650 = vadd.xlane.f32.xlu2 %v649_v53 }
 0xa26   :  { %v642_v54 = vpop.f32.mrf.mxu3 }
 0xa27   :  { %v643_v55 = vadd.f32 %v1598_v49, %v642_v54 }
 0xa29   :  { %v646_v56 = vadd.f32 %v643_v55, %v505_v14 }
 0xa2b   :  { %v652_v57 = vsel %vm155_vm3, %v646_v56, 0.0 }
 0xa2c   :  { %653 = vadd.xlane.f32.xlu1 %v652_v57 }
 0xa97   :  { %v651_v58 = vpop.xlane.xlu2 %650 }
 0xa98   :  { %v655_v59 = vmul.f32 %v651_v58, %v1924_v32 }
 0xa9a   :  { %v657_v60 = vsub.f32 %v645_v52, %v655_v59 }
 0xa9c   :  { %v659_v61 = vmul.f32 %v657_v60, %v657_v60 }
 0xa9e   :  { %v661_v62 = vsel %vm155_vm3, %v659_v61, 0.0 }
 0xa9f   :  { %v654_v63 = vpop.xlane.xlu1 %653  ;;  %662 = vadd.xlane.f32.xlu1 %v661_v62 }
 0xaa0   :  { %v656_v0 = vmul.f32 %v654_v63, %v1924_v32 }
 0xaa2   :  { %v658_v1 = vsub.f32 %v646_v56, %v656_v0 }
 0xaa4   :  { %v660_v2 = vmul.f32 %v658_v1, %v658_v1 }
 0xaa6   :  { %v664_v3 = vsel %vm155_vm3, %v660_v2, 0.0 }
 0xaa7   :  { %665 = vadd.xlane.f32.xlu1 %v664_v3 }
 0xb12   :  { %v663_v5 = vpop.xlane.xlu1 %662 }
 0xb13   :  { %v667_v9 = vmul.f32 %v663_v5, %v1924_v32 }
 0xb15   :  { %v669_v10 = vadd.f32 1e-12, %v667_v9 }
 0xb17   :  { %1641 = vrsqrt.f32 %v669_v10  ;;  %vm677_vm4 = vweird.f32 %v669_v10 }
 0xb1a   :  { %v666_v11 = vpop.xlane.xlu1 %665 }
 0xb1b   :  { %v668_v12 = vmul.f32 %v666_v11, %v1924_v32 }
 0xb1d   :  { %v1642_v13 = vpop.eup %1641  ;;  %v670_v14 = vadd.f32 1e-12, %v668_v12 }
 0xb1e   :  { %v672_v16 = vmul.f32 %v1642_v13, %v669_v10  ;;  %vm678_vm2 = vweird.f32 %v1642_v13 }
 0xb1f   :  { %1643 = vrsqrt.f32 %v670_v14  ;;  %vm679_vm5 = vmor %vm677_vm4, %vm678_vm2  ;;  %vm687_vm7 = vweird.f32 %v670_v14 }
 0xb20   :  { %v673_v17 = vmul.f32 %v1642_v13, %v672_v16 }
 0xb22   :  { %v674_v18 = vmul.f32 0.5, %v673_v17 }
 0xb24   :  { %v675_v15 = vsub.f32 1.5, %v674_v18 }
 0xb25   :  { %v1644_v20 = vpop.eup %1643 }
 0xb26   :  { %v676_v21 = vmul.f32 %v1642_v13, %v675_v15  ;;  %v682_v22 = vmul.f32 %v1644_v20, %v670_v14  ;;  %vm688_vm6 = vweird.f32 %v1644_v20 }
 0xb27   :  { %vm689_vm8 = vmor %vm687_vm7, %vm688_vm6  ;;  %vm1203_vm6 = vcmask 1040384   ;;  %vm1243_vm7 = vcmask 254976  }
 0xb28   :  { %v683_v23 = vmul.f32 %v1644_v20, %v682_v22  ;;  %v680_v25 = vsel %vm679_vm5, %v1642_v13, %v676_v21 }
 0xb29   :  { %v691_v28 = vmul.f32 %v680_v25, %v657_v60 }
 0xb2a   :  { %v684_v26 = vmul.f32 0.5, %v683_v23 }
 0xb2b   :  { %v696_v34 = vmul.f32 %v1599_v29, %v691_v28 }
 0xb2c   :  { %v685_v27 = vsub.f32 1.5, %v684_v26 }
 0xb2d   :  { %v2081_v37 = vadd.f32 %v1600_v35, %v696_v34 }
 0xb2e   :  { %v686_v30 = vmul.f32 %v1644_v20, %v685_v27 }
 0xb30   :  { %v690_v31 = vsel %vm689_vm8, %v1644_v20, %v686_v30 }
 0xb31   :  { %v692_v33 = vmul.f32 %v690_v31, %v658_v1 }
 0xb33   :  { %v697_v36 = vmul.f32 %v1599_v29, %v692_v33 }
 0xb35   :  { %v2083_v38 = vadd.f32 %v1600_v35, %v697_v36 }
 0xb37   :  { %v710_v39 = vpack.c.bf16 %v2083_v38, %v2081_v37 }
 0xb39   :  { %1425 = vmatmul.msk.bf16.vlgmr.msrb.gmra.mxu1 %vm155_vm3, %v710_v39 }
 0xbb6   :  { %v738_v40 = vpop.f32.mrf.mxu1 }
 0xbb7   :  { %v739_v43 = vadd.f32 %v1601_v41, %v738_v40 }
 0xbbe   :  { %v740_v42 = vpop.f32.mrf.mxu1 }
 0xbbf   :  { %v741_v44 = vadd.f32 %v1601_v41, %v740_v42  ;;  %v1550_v42 = vld [vmem:[%s2281_s7 + $0x18] sm:$0xff] }
 0xbc1   :  { %v743_v7 = vpack.c.bf16 %v741_v44, %v739_v43 }
 0xbc3   :  { %745 = vrot.lane.b32.xlu2 %v743_v7, %s1754_s26  ;;  %814 = vrot.lane.b32.xlu1 %v743_v7, %s1756_s0  ;;  %s2284_s26 = smov 64  }
 0xbc4   :  { %816 = vrot.lane.b32.xlu0 %v743_v7, %s2282_s2  ;;  %s1764_s2 = smov [#allocation6]  }
 0xc1d   :  { %v746_v45 = vpop.permute.xlu2 %745 }
 0xc1e   :  { %v751_v46 = vsel %vm261_vm11, %v746_v45, 0  ;;  %v1549_v45 = vld [vmem:[%s2281_s7 + $0x10] sm:$0xff] }
 0xc1f   :  { %760 = vmatpush.bf16.xpose.msra.mxu2 %v751_v46 }
 0xc26   :  { %1426 = vmatmul.msk.bf16.vlgmr.msra.gmra.mxu2 %vm261_vm11, %v743_v7 }
 0xc35   :  { %v815_v48 = vpop.permute.xlu1 %814 }
 0xc36   :  { %v817_v47 = vpop.permute.xlu0 %816 }
 0xc37   :  { %v822_v8 = vsel %vm261_vm11, %v817_v47, 0 }
 0xc38   :  { %831 = vmatpush.bf16.xpose.msra.mxu1 %v822_v8 }
 0xc3f   :  { %1428 = vmatmul.msk.bf16.vlgmr.msra.gmra.mxu1 %vm261_vm11, %v815_v48 }
 0xca9   :  { %v762_v49 = vpop.f32.mrf.mxu2 }
 0xcaa   :  { %v767_v50 = vmul.f32 0.25, %v762_v49 }
 0xcac   :  { %v769_v51 = vadd.f32 %v767_v50, %v1964_v19 }
 0xcae   :  { %v771_v52 = vsel %vm261_vm11, %v769_v51, -inf }
 0xcaf   :  { %772 = vmax.xlane.f32.xlu2 %v771_v52 }
 0xcb1   :  { %v764_v55 = vpop.f32.mrf.mxu2 }
 0xcb2   :  { %v768_v57 = vmul.f32 0.25, %v764_v55 }
 0xcb4   :  { %v770_v61 = vadd.f32 %v768_v57, %v1971_v24 }
 0xcb6   :  { %v774_v63 = vsel %vm261_vm11, %v770_v61, -inf }
 0xcbc   :  { %v833_v53 = vpop.f32.mrf.mxu1 }
 0xcbd   :  { %v838_v54 = vmul.f32 0.25, %v833_v53  ;;  %v1602_v53 = vld [vmem:[%s2235_s10 + $0x1] ss:$0 sm:$0xff] }
 0xcbf   :  { %v840_v56 = vadd.f32 %v838_v54, %v1964_v19 }
 0xcc1   :  { %v842_v58 = vsel %vm261_vm11, %v840_v56, -inf }
 0xcc2   :  { %843 = vmax.xlane.f32.xlu0 %v842_v58 }
 0xcc4   :  { %v835_v59 = vpop.f32.mrf.mxu1 }
 0xcc5   :  { %v839_v60 = vmul.f32 0.25, %v835_v59 }
 0xcc7   :  { %v841_v62 = vadd.f32 %v839_v60, %v1971_v24 }
 0xcc9   :  { %v845_v0 = vsel %vm261_vm11, %v841_v62, -inf }
 0xcca   :  { %775 = vmax.xlane.f32.xlu0 %v774_v63  ;;  %846 = vmax.xlane.f32.xlu1 %v845_v0 }
 0xd22   :  { %v773_v5 = vpop.xlane.xlu2 %772 }
 0xd23   :  { %v777_v13 = vsub.f32 %v769_v51, %v773_v5 }
 0xd25   :  { %v779_v14 = vmul.f32 1.442695, %v777_v13 }
 0xd35   :  { %v844_v1 = vpop.xlane.xlu0 %843 }
 0xd36   :  { %v848_v2 = vsub.f32 %v840_v56, %v844_v1 }
 0xd38   :  { %v850_v3 = vmul.f32 1.442695, %v848_v2 }
 0xd3a   :  { %1645 = vpow2.f32 %v850_v3 }
 0xd3d   :  { %v776_v19 = vpop.xlane.xlu0 %775  ;;  %v847_v4 = vpop.xlane.xlu1 %846 }
 0xd3e   :  { %v778_v6 = vsub.f32 %v770_v61, %v776_v19  ;;  %v849_v9 = vsub.f32 %v841_v62, %v847_v4 }
 0xd40   :  { %v1646_v10 = vpop.eup %1645  ;;  %v781_v11 = vmul.f32 1.442695, %v778_v6  ;;  %v852_v12 = vmul.f32 1.442695, %v849_v9 }
 0xd41   :  { %v854_v24 = vsel %vm261_vm11, %v1646_v10, 0.0 }
 0xd42   :  { %1647 = vpow2.f32 %v781_v11  ;;  %855 = vadd.xlane.f32.xlu0 %v854_v24  ;;  %v1551_v11 = vld [vmem:[%s2238_s13 + $0x10] sm:$0xff] }
 0xd43   :  { %1649 = vpow2.f32 %v852_v12 }
 0xd44   :  { %1651 = vpow2.f32 %v779_v14 }
 0xd48   :  { %v1648_v16 = vpop.eup %1647 }
 0xd49   :  { %v1650_v17 = vpop.eup %1649  ;;  %v786_v18 = vsel %vm261_vm11, %v1648_v16, 0.0 }
 0xd4a   :  { %787 = vadd.xlane.f32.xlu2 %v786_v18  ;;  %v857_v15 = vsel %vm261_vm11, %v1650_v17, 0.0  ;;  %v1652_v20 = vpop.eup %1651 }
 0xd4b   :  { %858 = vadd.xlane.f32.xlu1 %v857_v15  ;;  %v783_v21 = vsel %vm261_vm11, %v1652_v20, 0.0 }
 0xd53   :  { %784 = vadd.xlane.f32.xlu1 %v783_v21 }
 0xd56   :  { %865 = vrot.lane.b32.xlu0 %v743_v7, %s2283_s3 }
 0xd6c   :  { %794 = vrot.lane.b32.xlu1 %v743_v7, %s2284_s26 }
 0xdb5   :  { %v856_v22 = vpop.xlane.xlu0 %855 }
 0xdb6   :  { %1653 = vrcp.f32 %v856_v22 }
 0xdbc   :  { %v1654_v25 = vpop.eup %1653 }
 0xdbd   :  { %v862_v28 = vmul.f32 %v1654_v25, %v1646_v10  ;;  %v788_v33 = vpop.xlane.xlu2 %787 }
 0xdbe   :  { %v859_v23 = vpop.xlane.xlu1 %858 }
 0xdbf   :  { %1655 = vrcp.f32 %v859_v23 }
 0xdc5   :  { %v1656_v26 = vpop.eup %1655 }
 0xdc6   :  { %v863_v27 = vmul.f32 %v1656_v26, %v1650_v17  ;;  %v785_v31 = vpop.xlane.xlu1 %784 }
 0xdc7   :  { %1657 = vrcp.f32 %v785_v31 }
 0xdc8   :  { %v866_v29 = vpop.permute.xlu0 %865  ;;  %v864_v30 = vpack.c.bf16 %v863_v27, %v862_v28  ;;  %1659 = vrcp.f32 %v788_v33  ;;  %v1603_v28 = vld [vmem:[%s2236_s11 + $0x1] ss:$0 sm:$0xff]  ;;  %s1314_s11 = sshll.u32 %s2250_s25, 4  ;;  %s1315_s11 = int_to_ptr.hbm [resolvable:$true] %s1314_s11 }
 0xdc9   :  { %878 = vmatpush.bf16.msrb.mxu2 %v866_v29  ;;  %v1604_v33 = vld [vmem:[%s2237_s12 + $0x1] ss:$0 sm:$0xff] }
 0xdcc   :  { %1429 = vmatmul.msk.bf16.vlgmr.msrb.gmra.mxu2 %vm261_vm11, %v864_v30 }
 0xdcd   :  { %v1658_v34 = vpop.eup %1657 }
 0xdce   :  { %v1660_v35 = vpop.eup %1659  ;;  %v791_v36 = vmul.f32 %v1658_v34, %v1652_v20 }
 0xdcf   :  { %v792_v39 = vmul.f32 %v1660_v35, %v1648_v16 }
 0xdd1   :  { %v793_v41 = vpack.c.bf16 %v792_v39, %v791_v36 }
 0xdde   :  { %v795_v40 = vpop.permute.xlu1 %794 }
 0xddf   :  { %807 = vmatpush.bf16.msra.mxu0 %v795_v40 }
 0xde2   :  { %1427 = vmatmul.msk.bf16.vlgmr.msra.gmra.mxu0 %vm261_vm11, %v793_v41 }
 0xde3   :  { %927 = vmatpush.bf16.msrb.mxu0 %v1550_v42  ;;  %v1560_v42 = vld [vmem:[%s2240_s15 + $0x78] sm:$0xff] }
 0xde4   :  { %1124 = vmatpush.bf16.msrb.mxu1 %v1560_v42 }
 0xde7   :  { %928 = vmatpush.bf16.msrb.mxu0 %v1549_v45  ;;  %v1556_v45 = vld [vmem:[%s2240_s15 + $0x58] sm:$0xff] }
 0xe4f   :  { %v880_v43 = vpop.f32.mrf.mxu2 }
 0xe57   :  { %v882_v44 = vpop.f32.mrf.mxu2 }
 0xe58   :  { %v1585_v7 = vpack.i.bf16 %v882_v44, %v880_v43  ;;  %v1559_v43 = vld [vmem:[%s2240_s15 + $0x70] sm:$0xff]  ;;  %v1558_v44 = vld [vmem:[%s2240_s15 + $0x68] sm:$0xff] }
 0xe59   :  { %1125 = vmatpush.bf16.msrb.mxu1 %v1559_v43 }
 0xe5a   :  { %1586 = vrot.lane.b32.xlu2 %v1585_v7, %s2285_s4  ;;  %v1557_v7 = vld [vmem:[%s2240_s15 + $0x60] sm:$0xff] }
 0xe5d   :  { %1126 = vmatpush.bf16.msrb.mxu1 %v1558_v44 }
 0xe5f   :  { %v809_v46 = vpop.f32.mrf.mxu0 }
 0xe61   :  { %1127 = vmatpush.bf16.msrb.mxu1 %v1557_v7 }
 0xe65   :  { %1128 = vmatpush.bf16.msrb.mxu1 %v1556_v45  ;;  %v1607_v45 = vld [vmem:[%s2242_s17 + $0x1] ss:$0 sm:$0xff] }
 0xe67   :  { %v811_v49 = vpop.f32.mrf.mxu0 }
 0xeb4   :  { %v1587_v47 = vpop.permute.xlu2 %1586 }
 0xeb5   :  { %v1589_v8 = vunpack.i.h.bf16 %v1587_v47  ;;  %v1588_v48 = vunpack.i.l.bf16 %v1587_v47  ;;  %v1554_v47 = vld [vmem:[%s2240_s15 + $0x48] sm:$0xff] }
 0xeb7   :  { %v893_v50 = vsel %vm261_vm11, %v809_v46, %v1588_v48  ;;  %v894_v51 = vsel %vm261_vm11, %v811_v49, %v1589_v8  ;;  %v1555_v46 = vld [vmem:[%s2240_s15 + $0x50] sm:$0xff]  ;;  %v1605_v8 = vld [vmem:[%s2239_s14 + $0x1] ss:$0 sm:$0xff]  ;;  %s1763_s14 = smov 8  }
 0xeb8   :  { %v902_v52 = vpack.c.bf16 %v894_v51, %v893_v50  ;;  %1129 = vmatpush.bf16.msrb.mxu1 %v1555_v46  ;;  %v1553_v49 = vld [vmem:[%s2240_s15 + $0x40] sm:$0xff] }
 0xeba   :  { %1443 = vmatmul.msk.bf16.vlgmr.msrb.gmra.mxu0 %vm155_vm3, %v902_v52 }
 0xebc   :  { %1130 = vmatpush.bf16.msrb.mxu1 %v1554_v47 }
 0xec0   :  { %1131 = vmatpush.bf16.msrb.mxu1 %v1553_v49 }
 0xf37   :  { %v930_v54 = vpop.f32.mrf.mxu0 }
 0xf38   :  { %v931_v55 = vadd.f32 %v1602_v53, %v930_v54 }
 0xf3a   :  { %v935_v56 = vadd.f32 %v931_v55, %v2081_v37 }
 0xf3c   :  { %v941_v57 = vsel %vm155_vm3, %v935_v56, 0.0 }
 0xf3d   :  { %942 = vadd.xlane.f32.xlu0 %v941_v57 }
 0xf3f   :  { %v932_v58 = vpop.f32.mrf.mxu0 }
 0xf40   :  { %v933_v59 = vadd.f32 %v1602_v53, %v932_v58 }
 0xf42   :  { %v936_v60 = vadd.f32 %v933_v59, %v2083_v38  ;;  %v1552_v38 = vld [vmem:[%s2238_s13 + $0x18] sm:$0xff]  ;;  %s1761_s13 = smov [#allocation2]  }
 0xf43   :  { %1027 = vmatpush.bf16.msra.mxu3 %v1552_v38  ;;  %v1606_v38 = vld [vmem:[%s2241_s16 + $0x1] ss:$0 sm:$0xff]  ;;  %s1287_s30 = sshll.u32 %s1761_s13, 4  ;;  %s1288_s30 = int_to_ptr.vmem [resolvable:$true] %s1287_s30 }
 0xf44   :  { %v944_v61 = vsel %vm155_vm3, %v936_v60, 0.0 }
 0xf45   :  { %945 = vadd.xlane.f32.xlu1 %v944_v61 }
 0xf47   :  { %1028 = vmatpush.bf16.msra.mxu3 %v1551_v11 }
 0xfb0   :  { %v943_v62 = vpop.xlane.xlu0 %942 }
 0xfb1   :  { %v947_v63 = vmul.f32 %v943_v62, %v1924_v32 }
 0xfb3   :  { %v949_v0 = vsub.f32 %v935_v56, %v947_v63 }
 0xfb5   :  { %v951_v1 = vmul.f32 %v949_v0, %v949_v0 }
 0xfb7   :  { %v953_v2 = vsel %vm155_vm3, %v951_v1, 0.0 }
 0xfb8   :  { %v946_v3 = vpop.xlane.xlu1 %945  ;;  %954 = vadd.xlane.f32.xlu2 %v953_v2 }
 0xfb9   :  { %v948_v37 = vmul.f32 %v946_v3, %v1924_v32 }
 0xfbb   :  { %v950_v19 = vsub.f32 %v936_v60, %v948_v37 }
 0xfbd   :  { %v952_v4 = vmul.f32 %v950_v19, %v950_v19 }
 0xfbf   :  { %v956_v5 = vsel %vm155_vm3, %v952_v4, 0.0 }
 0xfc0   :  { %957 = vadd.xlane.f32.xlu0 %v956_v5 }
0x102b   :  { %v955_v6 = vpop.xlane.xlu2 %954 }
0x102c   :  { %v959_v9 = vmul.f32 %v955_v6, %v1924_v32 }
0x102e   :  { %v961_v10 = vadd.f32 1e-12, %v959_v9 }
0x1030   :  { %1661 = vrsqrt.f32 %v961_v10  ;;  %vm969_vm10 = vweird.f32 %v961_v10 }
0x1033   :  { %v958_v12 = vpop.xlane.xlu0 %957 }
0x1034   :  { %v960_v13 = vmul.f32 %v958_v12, %v1924_v32 }
0x1036   :  { %v1662_v24 = vpop.eup %1661  ;;  %v962_v14 = vadd.f32 1e-12, %v960_v13 }
0x1037   :  { %v964_v16 = vmul.f32 %v1662_v24, %v961_v10  ;;  %vm970_vm9 = vweird.f32 %v1662_v24 }
0x1038   :  { %1663 = vrsqrt.f32 %v962_v14  ;;  %vm971_vm11 = vmor %vm969_vm10, %vm970_vm9  ;;  %vm979_vm13 = vweird.f32 %v962_v14 }
0x1039   :  { %v965_v17 = vmul.f32 %v1662_v24, %v964_v16 }
0x103b   :  { %v966_v18 = vmul.f32 0.5, %v965_v17 }
0x103d   :  { %v967_v15 = vsub.f32 1.5, %v966_v18 }
0x103e   :  { %v1664_v20 = vpop.eup %1663 }
0x103f   :  { %v968_v21 = vmul.f32 %v1662_v24, %v967_v15  ;;  %v974_v22 = vmul.f32 %v1664_v20, %v962_v14  ;;  %vm980_vm12 = vweird.f32 %v1664_v20 }
0x1040   :  { %vm981_vm14 = vmor %vm979_vm13, %vm980_vm12 }
0x1041   :  { %v975_v23 = vmul.f32 %v1664_v20, %v974_v22  ;;  %v972_v25 = vsel %vm971_vm11, %v1662_v24, %v968_v21 }
0x1042   :  { %v983_v29 = vmul.f32 %v972_v25, %v949_v0 }
0x1043   :  { %v976_v26 = vmul.f32 0.5, %v975_v23 }
0x1044   :  { %v988_v34 = vmul.f32 %v1603_v28, %v983_v29  ;;  %v1562_v29 = vld [vmem:[%s2244_s19 + $0x8] sm:$0xff] }
0x1045   :  { %v977_v27 = vsub.f32 1.5, %v976_v26  ;;  %1235 = vmatpush.bf16.msra.mxu2 %v1562_v29 }
0x1046   :  { %v993_v39 = vadd.f32 %v1604_v33, %v988_v34 }
0x1047   :  { %v978_v30 = vmul.f32 %v1664_v20, %v977_v27 }
0x1049   :  { %v982_v31 = vsel %vm981_vm14, %v1664_v20, %v978_v30 }
0x104a   :  { %v984_v35 = vmul.f32 %v982_v31, %v950_v19  ;;  %v1561_v31 = vld [vmem:[%s2244_s19] sm:$0xff] }
0x104b   :  { %1236 = vmatpush.bf16.msra.mxu2 %v1561_v31 }
0x104c   :  { %v989_v36 = vmul.f32 %v1603_v28, %v984_v35 }
0x104e   :  { %v994_v40 = vadd.f32 %v1604_v33, %v989_v36 }
0x1050   :  { %v1002_v41 = vpack.c.bf16 %v994_v40, %v993_v39 }
0x1052   :  { %1459 = vmatmul.msk.bf16.vlgmr.msra.gmra.mxu3 %vm155_vm3, %v1002_v41 }
0x10d5   :  { %v1030_v48 = vpop.f32.mrf.mxu3 }
0x10d6   :  { %v1031_v50 = vadd.f32 %v1605_v8, %v1030_v48 }
0x10d8   :  { %v1035_v51 = vmul.f32 %v1031_v50, %v1031_v50 }
0x10da   :  { %v1037_v52 = vmul.f32 %v1035_v51, %v1031_v50 }
0x10dc   :  { %v1039_v53 = vmul.f32 0.044715, %v1037_v52 }
0x10dd   :  { %v1032_v54 = vpop.f32.mrf.mxu3 }
0x10de   :  { %v1041_v55 = vadd.f32 %v1039_v53, %v1031_v50  ;;  %v1033_v56 = vadd.f32 %v1605_v8, %v1032_v54 }
0x10e0   :  { %v1043_v57 = vmul.f32 0.7978846, %v1041_v55  ;;  %v1036_v58 = vmul.f32 %v1033_v56, %v1033_v56 }
0x10e2   :  { %v1038_v59 = vmul.f32 %v1036_v58, %v1033_v56  ;;  %1665 = vtanh.f32 %v1043_v57 }
0x10e4   :  { %v1040_v60 = vmul.f32 0.044715, %v1038_v59 }
0x10e6   :  { %v1042_v61 = vadd.f32 %v1040_v60, %v1033_v56  ;;  %v1564_v60 = vld [vmem:[%s2246_s21 + $0x8] sm:$0xff] }
0x10e7   :  { %1275 = vmatpush.bf16.msra.mxu0 %v1564_v60 }
0x10e8   :  { %v1044_v62 = vmul.f32 0.7978846, %v1042_v61  ;;  %v1666_v63 = vpop.eup %1665  ;;  %v1563_v61 = vld [vmem:[%s2246_s21] sm:$0xff]  ;;  %s1303_s21 = sshll.u32 %s2249_s24, 4  ;;  %s1312_s24 = sshll.u32 %s1764_s2, 4  ;;  %s1304_s21 = int_to_ptr.hbm [resolvable:$true] %s1303_s21  ;;  %s1313_s24 = int_to_ptr.vmem [resolvable:$true] %s1312_s24 }
0x10e9   :  { %v1047_v0 = vadd.f32 1.0, %v1666_v63 }
0x10ea   :  { %1667 = vtanh.f32 %v1044_v62  ;;  %v1609_v62 = vld [vmem:[%s2245_s20] ss:$0 sm:$0xff] }
0x10eb   :  { %v1049_v2 = vmul.f32 0.5, %v1047_v0  ;;  %1276 = vmatpush.bf16.msra.mxu0 %v1563_v61 }
0x10ed   :  { %v1051_v19 = vmul.f32 %v1049_v2, %v1031_v50 }
0x10f0   :  { %v1668_v1 = vpop.eup %1667 }
0x10f1   :  { %v1048_v3 = vadd.f32 1.0, %v1668_v1 }
0x10f3   :  { %v1050_v37 = vmul.f32 0.5, %v1048_v3 }
0x10f5   :  { %v1052_v4 = vmul.f32 %v1050_v37, %v1033_v56  ;;  %v1610_v37 = vld [vmem:[%s2247_s22] ss:$0 sm:$0xff] }
0x10f7   :  { %v1072_v5 = vpack.c.bf16 %v1052_v4, %v1051_v19 }
0x10f9   :  { %1132 = vmatmul.bf16.vlgmr.msrb.gmra.mxu1 %v1072_v5 }
0x1176   :  { %v1133_v6 = vpop.f32.mrf.mxu1 }
0x1177   :  { %v1134_v9 = vadd.f32 %v1606_v38, %v1133_v6 }
0x1179   :  { %v1138_v10 = vadd.f32 %v1134_v9, %v993_v39 }
0x117b   :  { %v1144_v11 = vsel %vm155_vm3, %v1138_v10, 0.0 }
0x117c   :  { %1145 = vadd.xlane.f32.xlu1 %v1144_v11 }
0x117e   :  { %v1135_v12 = vpop.f32.mrf.mxu1 }
0x117f   :  { %v1136_v13 = vadd.f32 %v1606_v38, %v1135_v12 }
0x1181   :  { %v1139_v24 = vadd.f32 %v1136_v13, %v994_v40 }
0x1183   :  { %v1147_v14 = vsel %vm155_vm3, %v1139_v24, 0.0 }
0x1184   :  { %1148 = vadd.xlane.f32.xlu0 %v1147_v14 }
0x11ef   :  { %v1146_v16 = vpop.xlane.xlu1 %1145 }
0x11f0   :  { %v1150_v17 = vmul.f32 %v1146_v16, %v1924_v32 }
0x11f2   :  { %v1152_v18 = vsub.f32 %v1138_v10, %v1150_v17 }
0x11f4   :  { %v1154_v15 = vmul.f32 %v1152_v18, %v1152_v18 }
0x11f6   :  { %v1156_v20 = vsel %vm155_vm3, %v1154_v15, 0.0 }
0x11f7   :  { %v1149_v21 = vpop.xlane.xlu0 %1148  ;;  %1157 = vadd.xlane.f32.xlu2 %v1156_v20 }
0x11f8   :  { %v1151_v22 = vmul.f32 %v1149_v21, %v1924_v32 }
0x11fa   :  { %v1153_v23 = vsub.f32 %v1139_v24, %v1151_v22 }
0x11fc   :  { %v1155_v25 = vmul.f32 %v1153_v23, %v1153_v23 }
0x11fe   :  { %v1159_v26 = vsel %vm155_vm3, %v1155_v25, 0.0 }
0x11ff   :  { %1160 = vadd.xlane.f32.xlu0 %v1159_v26 }
0x126a   :  { %v1158_v27 = vpop.xlane.xlu2 %1157 }
0x126b   :  { %v1162_v28 = vmul.f32 %v1158_v27, %v1924_v32 }
0x126d   :  { %v1164_v30 = vadd.f32 1e-12, %v1162_v28 }
0x126f   :  { %1669 = vrsqrt.f32 %v1164_v30  ;;  %vm1172_vm0 = vweird.f32 %v1164_v30 }
0x1272   :  { %v1161_v33 = vpop.xlane.xlu0 %1160 }
0x1273   :  { %v1163_v34 = vmul.f32 %v1161_v33, %v1924_v32  ;;  %v1608_v32 = vld [vmem:[%s2243_s18 + $0x1] ss:$0 sm:$0xff] }
0x1275   :  { %v1670_v35 = vpop.eup %1669  ;;  %v1165_v36 = vadd.f32 1e-12, %v1163_v34 }
0x1276   :  { %v1167_v39 = vmul.f32 %v1670_v35, %v1164_v30  ;;  %vm1173_vm15 = vweird.f32 %v1670_v35 }
0x1277   :  { %1671 = vrsqrt.f32 %v1165_v36  ;;  %vm1174_vm1 = vmor %vm1172_vm0, %vm1173_vm15  ;;  %vm1182_vm4 = vweird.f32 %v1165_v36 }
0x1278   :  { %v1168_v40 = vmul.f32 %v1670_v35, %v1167_v39 }
0x127a   :  { %v1169_v41 = vmul.f32 0.5, %v1168_v40 }
0x127c   :  { %v1170_v42 = vsub.f32 1.5, %v1169_v41 }
0x127d   :  { %v1672_v43 = vpop.eup %1671 }
0x127e   :  { %v1171_v44 = vmul.f32 %v1670_v35, %v1170_v42  ;;  %v1177_v7 = vmul.f32 %v1672_v43, %v1165_v36  ;;  %vm1183_vm2 = vweird.f32 %v1672_v43 }
0x127f   :  { %vm1184_vm5 = vmor %vm1182_vm4, %vm1183_vm2 }
0x1280   :  { %v1175_v46 = vsel %vm1174_vm1, %v1670_v35, %v1171_v44  ;;  %v1178_v47 = vmul.f32 %v1672_v43, %v1177_v7 }
0x1281   :  { %v1186_v8 = vmul.f32 %v1175_v46, %v1152_v18 }
0x1282   :  { %v1179_v48 = vmul.f32 0.5, %v1178_v47 }
0x1283   :  { %v1191_v49 = vmul.f32 %v1607_v45, %v1186_v8 }
0x1284   :  { %v1180_v50 = vsub.f32 1.5, %v1179_v48 }
0x1285   :  { %v1196_v51 = vadd.f32 %v1608_v32, %v1191_v49 }
0x1286   :  { %v1181_v52 = vmul.f32 %v1672_v43, %v1180_v50 }
0x1287   :  { %1198 = vst.msk [vmem:[#allocation2] sm:$0xff] %vm155_vm3, %v1196_v51 }
0x1288   :  { %v1185_v53 = vsel %vm1184_vm5, %v1672_v43, %v1181_v52 }
0x1289   :  { %v1187_v54 = vmul.f32 %v1185_v53, %v1153_v23 }
0x128b   :  { %v1192_v55 = vmul.f32 %v1607_v45, %v1187_v54 }
0x128d   :  { %v1197_v56 = vadd.f32 %v1608_v32, %v1192_v55 }
0x128f   :  { %v1201_v57 = vrot.slane %v1197_v56, 7  ;;  %1199 = vst.msk [vmem:[#allocation2 + $0x8] sm:$0xff] %vm155_vm3, %v1197_v56 }
0x1290   :  { %1295 = dma.vmem_to_hbm [thread:$0]  %s1288_s30, 256, %s1290_s6, [#allocation3], %s1762_s29, %s1762_s29, %s1763_s14  }
0x1291   :  { %v1204_v58 = vsel %vm1203_vm6, %v1196_v51, %v1201_v57 }
0x1292   :  { %v1210_v59 = vpack.c.bf16 %v1204_v58, %v1204_v58 }
0x1294   :  { %1519 = vmatmul.msk.bf16.vlgmr.msra.gmra.mxu2 %vm155_vm3, %v1210_v59 }
0x1317   :  { %v1238_v63 = vpop.f32.mrf.mxu2 }
0x1318   :  { %v1239_v0 = vadd.f32 %v1609_v62, %v1238_v63 }
0x131a   :  { %1673 = vtanh.f32 %v1239_v0 }
0x131f   :  { %v1240_v1 = vpop.f32.mrf.mxu2 }
0x1320   :  { %v1674_v2 = vpop.eup %1673 }
0x1321   :  { %v1250_v3 = vpack.c.bf16 %v1674_v2, %v1674_v2  ;;  %1244 = vst.msk [vmem:[#allocation4] sm:$0x3] %vm1243_vm7, %v1674_v2 }
0x1322   :  { %1306 = dma.vmem_to_hbm [thread:$0]  %s1302_s5, 32, %s1304_s21, [#allocation5]  }
0x1323   :  { %1528 = vmatmul.msk.bf16.vlgmr.msra.gmra.mxu0 %vm155_vm3, %v1250_v3 }
0x13a0   :  { %v1278_v19 = vpop.f32.mrf.mxu0 }
0x13a1   :  { %v1279_v4 = vadd.f32 %v1610_v37, %v1278_v19 }
0x13a3   :  { %1282 = vst [vmem:[#allocation6] sm:$0x3] %v1279_v4 }
0x13a4   :  { %1317 = dma.vmem_to_hbm [thread:$0]  %s1313_s24, 32, %s1315_s11, [#allocation5]  }
0x13a8   :  { %v1280_v5 = vpop.f32.mrf.mxu0 }
0x13a9   :  { %1747 = dma.done.wait [#allocation3], 256  }
0x13aa   :  { %1748 = vsyncadd [#allocation3], 4294967040 }
0x13ab   :  { %1749 = dma.done.wait [#allocation5], 64  }
0x13ac   :  { %1750 = vsyncadd [#allocation5], 4294967232 }
0x13ad   :  { %1330 = vsyncpa [#allocation3], 1 }
0x13ae   :  { %1331 = vsyncpa [#allocation5], 1 }

</bundles_post_ra>
